<compile_context>
chip_gen: v6e
topology: v6e:2x2x1
jax: 0.10.0
libtpu: 0.0.40
codegen_flags: <defaults>
</compile_context>

<pallas_src>
import jax
import jax.numpy as jnp
from jax import lax
from jax.experimental import pallas as pl
from jax.experimental.pallas import tpu as pltpu


TAPS = [(dh, dw) for dh in (-1, 0, 1) for dw in (-1, 0, 1)]  # tap index = kh*3 + kw


# -------------------------------- kernel body ---------------------------------

def _make_atter_kernel(W, n_stages):
    """Builds the kernel body for a static image width W (shifts are static)."""

    def kernel(x_ref, m_ref, w_ref, b_ref, wfc_ref, o_ref, col_ref):
        # x_ref:   (CP, N)       f32 input (channels on sublanes, N=B*H*W lanes)
        # m_ref:   (9, CP, N)    f32 0/1 SAME-pad + batch-seam masks, one per tap
        # w_ref:   (4, CP, 9*CP) bf16 BN-folded conv weights, im2col layout
        # b_ref:   (4, CP, 1)    f32 folded BN bias
        # wfc_ref: (CP, 1)       f32 1x1 "fc" conv weight
        # o_ref:   (1, N)        f32 sigmoid(logits), lane-dense
        # col_ref: (9*CP, N)     f32 VMEM scratch holding the im2col columns
        CP, N = x_ref.shape

        h = x_ref[...]                                     # f32 activations
        for stage in range(n_stages):    # 2x DoubleConv == 4x (conv3x3+BN+ReLU)
            # Stream the 9 shifted+masked taps through the VMEM scratch.
            for t, (dh, dw) in enumerate(TAPS):
                s = dh * W + dw          # want col[p] = h[p + s] (zero-padded)
                if s == 0:
                    col = h              # centre tap: no shift, always valid
                else:
                    col = pltpu.roll(h, (-s) % N, axis=1) * m_ref[t]
                col_ref[pl.ds(t * CP, CP), :] = col
            # Single K = 9*CP matmul per stage; bf16 MXU inputs, f32 accumulate.
            y = jnp.dot(w_ref[stage], col_ref[...].astype(jnp.bfloat16),
                        preferred_element_type=jnp.float32)
            h = jnp.maximum(y + b_ref[stage], 0.0)         # folded BN bias + ReLU

        feat = h + x_ref[...]                              # residual before fc
        # 1x1 "fc" conv as VPU multiply + sublane reduction (no M=1 MXU matmul).
        logits = jnp.sum(feat * wfc_ref[...], axis=0, keepdims=True)   # (1, N)
        o_ref[...] = jax.nn.sigmoid(logits)

    return kernel


# ------------------------- one-time parameter packing --------------------------

def pack_params(w_folded, biases, wfc, C):
    """Pack BN-folded conv weights / biases / fc weight once at model load."""
    CP = max(8, ((C + 7) // 8) * 8)          # pad channels to a full sublane tile
    w_rows = []
    for w in w_folded:                        # (3, 3, Cin, Cout), BN-folded
        wp = jnp.pad(w, ((0, 0), (0, 0), (0, CP - C), (0, CP - C)))
        # im2col column index = tap*CP + cin  (tap = kh*3 + kw)
        w_rows.append(jnp.transpose(wp, (3, 0, 1, 2)).reshape(CP, 9 * CP))
    w_stack = jnp.stack(w_rows, axis=0).astype(jnp.bfloat16)          # (4, CP, 9*CP)
    b_stack = jnp.stack([jnp.pad(b, (0, CP - C)) for b in biases],
                        axis=0).reshape(len(biases), CP, 1).astype(jnp.float32)
    wfc_col = jnp.pad(wfc.reshape(C, 1),
                      ((0, CP - C), (0, 0))).astype(jnp.float32)       # (CP, 1)
    return w_stack, b_stack, wfc_col


def make_masks(B, H, W, CP):
    """f32 0/1 masks (9, CP, N): SAME zero-padding + batch-seam/wrap zeroing."""
    N = B * H * W
    lane = jnp.arange(N, dtype=jnp.int32)
    w_idx = lane % W
    h_idx = (lane // W) % H
    ms = []
    for dh, dw in TAPS:
        valid = ((h_idx + dh >= 0) & (h_idx + dh < H) &
                 (w_idx + dw >= 0) & (w_idx + dw < W))
        ms.append(jnp.broadcast_to(valid[None, :], (CP, N)))
    return jnp.stack(ms, axis=0).astype(jnp.float32)                   # (9, CP, N)


# --------------------------------- forward ------------------------------------

@jax.jit
def lidc_i2a_atter(x_nchw, w_stack, b_stack, wfc_col, masks):
    """x_nchw: (B, C, H, W) f32.  Returns pred: (B, 1, H, W) in [0, 1]."""
    B, C, H, W = x_nchw.shape
    CP = w_stack.shape[1]
    N = B * H * W

    # Per-call input repack: (B, C, H, W) -> (CP, B*H*W), channels on sublanes.
    x_p = jnp.transpose(x_nchw.astype(jnp.float32), (1, 0, 2, 3)).reshape(C, N)
    x_p = jnp.pad(x_p, ((0, CP - C), (0, 0)))

    kernel = _make_atter_kernel(W, n_stages=w_stack.shape[0])

    # Whole batch in one un-gridded invocation; ~0.6 MiB working set.
    out = pl.pallas_call(
        kernel,
        out_shape=jax.ShapeDtypeStruct((1, N), jnp.float32),
        scratch_shapes=[pltpu.VMEM((9 * CP, N), jnp.float32)],
    )(x_p, masks, w_stack, b_stack, wfc_col)

    return out.reshape(B, 1, H, W)


# ---------------------- deterministic parameter construction ------------------

def make_params(key, C):
    """Four (conv3x3 no-bias + BN) stages + one 1x1 conv, BN folded (eval mode)."""
    eps = 1e-5
    w_folded, biases = [], []
    for _ in range(4):
        key, k1, k2, k3, k4, k5 = jax.random.split(key, 6)
        w_oihw = 0.1 * jax.random.normal(k1, (C, C, 3, 3), jnp.float32)   # PyTorch layout
        gamma = 1.0 + 0.1 * jax.random.normal(k2, (C,), jnp.float32)
        beta = 0.05 * jax.random.normal(k3, (C,), jnp.float32)
        running_mean = 0.1 * jax.random.normal(k4, (C,), jnp.float32)
        running_var = 1.0 + 0.1 * jax.random.uniform(k5, (C,), jnp.float32)
        scale = gamma / jnp.sqrt(running_var + eps)
        w_hwio = jnp.transpose(w_oihw, (2, 3, 1, 0))                      # (3,3,Cin,Cout)
        w_folded.append(w_hwio * scale[None, None, None, :])
        biases.append(beta - running_mean * scale)
    key, kf = jax.random.split(key)
    w_fc_torch = 0.2 * jax.random.normal(kf, (1, C, 1, 1), jnp.float32)   # (Cout=1,Cin,1,1)
    wfc = w_fc_torch[0, :, 0, 0].reshape(C, 1)
    return w_folded, biases, wfc


# ------------------------------ plain-JAX reference ----------------------------

def ref_forward(x_nchw, w_folded, biases, wfc):
    dn = ("NHWC", "HWIO", "NHWC")
    x = jnp.transpose(x_nchw, (0, 2, 3, 1)).astype(jnp.float32)
    h = x
    for w, b in zip(w_folded, biases):
        y = lax.conv_general_dilated(h, w, (1, 1), "SAME", dimension_numbers=dn)
        h = jnp.maximum(y + b.reshape(1, 1, 1, -1), 0.0)
    feat = h + x
    C = x.shape[-1]
    logits = lax.conv_general_dilated(feat, wfc.reshape(1, 1, C, 1), (1, 1), "SAME",
                                      dimension_numbers=dn)
    return jnp.transpose(jax.nn.sigmoid(logits), (0, 3, 1, 2))


# ----------------------------------- main --------------------------------------

if __name__ == "__main__":
    B, C, H = 2, 4, 16
    key = jax.random.PRNGKey(0)
    key, kx = jax.random.split(key)
    x = jax.random.normal(kx, (B, C, H, H), jnp.float32)

    w_folded, biases, wfc = make_params(key, C)

    # One-time packing / mask construction (off the per-call path).
    w_stack, b_stack, wfc_col = pack_params(w_folded, biases, wfc, C)
    masks = make_masks(B, H, H, w_stack.shape[1])

    pred = lidc_i2a_atter(x, w_stack, b_stack, wfc_col, masks)
    pred = jax.block_until_ready(pred)

    assert pred.shape == (B, 1, H, H), pred.shape
    ref = jax.block_until_ready(ref_forward(x, w_folded, biases, wfc))
    max_err = float(jnp.max(jnp.abs(pred - ref)))
    # bf16 MXU inputs (per perf review) -> compare against the pure-f32
    # reference with a correspondingly looser tolerance.
    assert jnp.allclose(pred, ref, atol=2e-2, rtol=2e-2), max_err

    print("KERNEL_OK")
</pallas_src>

<mosaic_0001>
module attributes {stable_mosaic.version = 11 : i64} {
  func.func @kernel(%arg0: memref<8x512xf32, #tpu.memory_space<vmem>>, %arg1: memref<9x8x512xf32, #tpu.memory_space<vmem>>, %arg2: memref<4x8x72xbf16, #tpu.memory_space<vmem>>, %arg3: memref<4x8x1xf32, #tpu.memory_space<vmem>>, %arg4: memref<8x1xf32, #tpu.memory_space<vmem>>, %arg5: memref<1x512xf32, #tpu.memory_space<vmem>>, %arg6: memref<72x512xf32, #tpu.memory_space<vmem>>) attributes {dimension_semantics = [], scalar_prefetch = 0 : i64, scratch_operands = 1 : i64, tpu.core_type = #tpu.core_type<tc>} {
    %c0 = arith.constant 0 : index
    %c0_0 = arith.constant 0 : index
    %0 = vector.load %arg0[%c0, %c0_0] : memref<8x512xf32, #tpu.memory_space<vmem>>, vector<8x512xf32>
    %c17_i32 = arith.constant 17 : i32
    %1 = tpu.dynamic_rotate %0 by %c17_i32 dim 1 : vector<8x512xf32>, i32 -> vector<8x512xf32>
    %c0_1 = arith.constant 0 : index
    %c0_2 = arith.constant 0 : index
    %c0_3 = arith.constant 0 : index
    %2 = vector.load %arg1[%c0_1, %c0_2, %c0_3] : memref<9x8x512xf32, #tpu.memory_space<vmem>>, vector<1x8x512xf32>
    %3 = vector.shape_cast %2 : vector<1x8x512xf32> to vector<8x512xf32>
    %4 = arith.mulf %1, %3 : vector<8x512xf32>
    %c0_4 = arith.constant 0 : index
    %c0_5 = arith.constant 0 : index
    %5 = vector.load %arg6[%c0_4, %c0_5] : memref<72x512xf32, #tpu.memory_space<vmem>>, vector<8x512xf32>
    tpu.vector_store %arg6[%c0_4, %c0_5], %4 {strides = array<i32>} : memref<72x512xf32, #tpu.memory_space<vmem>>, vector<8x512xf32>,
    %c16_i32 = arith.constant 16 : i32
    %6 = tpu.dynamic_rotate %0 by %c16_i32 dim 1 : vector<8x512xf32>, i32 -> vector<8x512xf32>
    %c1 = arith.constant 1 : index
    %c0_6 = arith.constant 0 : index
    %c0_7 = arith.constant 0 : index
    %7 = vector.load %arg1[%c1, %c0_6, %c0_7] : memref<9x8x512xf32, #tpu.memory_space<vmem>>, vector<1x8x512xf32>
    %8 = vector.shape_cast %7 : vector<1x8x512xf32> to vector<8x512xf32>
    %9 = arith.mulf %6, %8 : vector<8x512xf32>
    %c8 = arith.constant 8 : index
    %c0_8 = arith.constant 0 : index
    %10 = vector.load %arg6[%c8, %c0_8] : memref<72x512xf32, #tpu.memory_space<vmem>>, vector<8x512xf32>
    tpu.vector_store %arg6[%c8, %c0_8], %9 {strides = array<i32>} : memref<72x512xf32, #tpu.memory_space<vmem>>, vector<8x512xf32>,
    %c15_i32 = arith.constant 15 : i32
    %11 = tpu.dynamic_rotate %0 by %c15_i32 dim 1 : vector<8x512xf32>, i32 -> vector<8x512xf32>
    %c2 = arith.constant 2 : index
    %c0_9 = arith.constant 0 : index
    %c0_10 = arith.constant 0 : index
    %12 = vector.load %arg1[%c2, %c0_9, %c0_10] : memref<9x8x512xf32, #tpu.memory_space<vmem>>, vector<1x8x512xf32>
    %13 = vector.shape_cast %12 : vector<1x8x512xf32> to vector<8x512xf32>
    %14 = arith.mulf %11, %13 : vector<8x512xf32>
    %c16 = arith.constant 16 : index
    %c0_11 = arith.constant 0 : index
    %15 = vector.load %arg6[%c16, %c0_11] : memref<72x512xf32, #tpu.memory_space<vmem>>, vector<8x512xf32>
    tpu.vector_store %arg6[%c16, %c0_11], %14 {strides = array<i32>} : memref<72x512xf32, #tpu.memory_space<vmem>>, vector<8x512xf32>,
    %c1_i32 = arith.constant 1 : i32
    %16 = tpu.dynamic_rotate %0 by %c1_i32 dim 1 : vector<8x512xf32>, i32 -> vector<8x512xf32>
    %c3 = arith.constant 3 : index
    %c0_12 = arith.constant 0 : index
    %c0_13 = arith.constant 0 : index
    %17 = vector.load %arg1[%c3, %c0_12, %c0_13] : memref<9x8x512xf32, #tpu.memory_space<vmem>>, vector<1x8x512xf32>
    %18 = vector.shape_cast %17 : vector<1x8x512xf32> to vector<8x512xf32>
    %19 = arith.mulf %16, %18 : vector<8x512xf32>
    %c24 = arith.constant 24 : index
    %c0_14 = arith.constant 0 : index
    %20 = vector.load %arg6[%c24, %c0_14] : memref<72x512xf32, #tpu.memory_space<vmem>>, vector<8x512xf32>
    tpu.vector_store %arg6[%c24, %c0_14], %19 {strides = array<i32>} : memref<72x512xf32, #tpu.memory_space<vmem>>, vector<8x512xf32>,
    %c32 = arith.constant 32 : index
    %c0_15 = arith.constant 0 : index
    %21 = vector.load %arg6[%c32, %c0_15] : memref<72x512xf32, #tpu.memory_space<vmem>>, vector<8x512xf32>
    tpu.vector_store %arg6[%c32, %c0_15], %0 {strides = array<i32>} : memref<72x512xf32, #tpu.memory_space<vmem>>, vector<8x512xf32>,
    %c511_i32 = arith.constant 511 : i32
    %22 = tpu.dynamic_rotate %0 by %c511_i32 dim 1 : vector<8x512xf32>, i32 -> vector<8x512xf32>
    %c5 = arith.constant 5 : index
    %c0_16 = arith.constant 0 : index
    %c0_17 = arith.constant 0 : index
    %23 = vector.load %arg1[%c5, %c0_16, %c0_17] : memref<9x8x512xf32, #tpu.memory_space<vmem>>, vector<1x8x512xf32>
    %24 = vector.shape_cast %23 : vector<1x8x512xf32> to vector<8x512xf32>
    %25 = arith.mulf %22, %24 : vector<8x512xf32>
    %c40 = arith.constant 40 : index
    %c0_18 = arith.constant 0 : index
    %26 = vector.load %arg6[%c40, %c0_18] : memref<72x512xf32, #tpu.memory_space<vmem>>, vector<8x512xf32>
    tpu.vector_store %arg6[%c40, %c0_18], %25 {strides = array<i32>} : memref<72x512xf32, #tpu.memory_space<vmem>>, vector<8x512xf32>,
    %c497_i32 = arith.constant 497 : i32
    %27 = tpu.dynamic_rotate %0 by %c497_i32 dim 1 : vector<8x512xf32>, i32 -> vector<8x512xf32>
    %c6 = arith.constant 6 : index
    %c0_19 = arith.constant 0 : index
    %c0_20 = arith.constant 0 : index
    %28 = vector.load %arg1[%c6, %c0_19, %c0_20] : memref<9x8x512xf32, #tpu.memory_space<vmem>>, vector<1x8x512xf32>
    %29 = vector.shape_cast %28 : vector<1x8x512xf32> to vector<8x512xf32>
    %30 = arith.mulf %27, %29 : vector<8x512xf32>
    %c48 = arith.constant 48 : index
    %c0_21 = arith.constant 0 : index
    %31 = vector.load %arg6[%c48, %c0_21] : memref<72x512xf32, #tpu.memory_space<vmem>>, vector<8x512xf32>
    tpu.vector_store %arg6[%c48, %c0_21], %30 {strides = array<i32>} : memref<72x512xf32, #tpu.memory_space<vmem>>, vector<8x512xf32>,
    %c496_i32 = arith.constant 496 : i32
    %32 = tpu.dynamic_rotate %0 by %c496_i32 dim 1 : vector<8x512xf32>, i32 -> vector<8x512xf32>
    %c7 = arith.constant 7 : index
    %c0_22 = arith.constant 0 : index
    %c0_23 = arith.constant 0 : index
    %33 = vector.load %arg1[%c7, %c0_22, %c0_23] : memref<9x8x512xf32, #tpu.memory_space<vmem>>, vector<1x8x512xf32>
    %34 = vector.shape_cast %33 : vector<1x8x512xf32> to vector<8x512xf32>
    %35 = arith.mulf %32, %34 : vector<8x512xf32>
    %c56 = arith.constant 56 : index
    %c0_24 = arith.constant 0 : index
    %36 = vector.load %arg6[%c56, %c0_24] : memref<72x512xf32, #tpu.memory_space<vmem>>, vector<8x512xf32>
    tpu.vector_store %arg6[%c56, %c0_24], %35 {strides = array<i32>} : memref<72x512xf32, #tpu.memory_space<vmem>>, vector<8x512xf32>,
    %c495_i32 = arith.constant 495 : i32
    %37 = tpu.dynamic_rotate %0 by %c495_i32 dim 1 : vector<8x512xf32>, i32 -> vector<8x512xf32>
    %c8_25 = arith.constant 8 : index
    %c0_26 = arith.constant 0 : index
    %c0_27 = arith.constant 0 : index
    %38 = vector.load %arg1[%c8_25, %c0_26, %c0_27] : memref<9x8x512xf32, #tpu.memory_space<vmem>>, vector<1x8x512xf32>
    %39 = vector.shape_cast %38 : vector<1x8x512xf32> to vector<8x512xf32>
    %40 = arith.mulf %37, %39 : vector<8x512xf32>
    %c64 = arith.constant 64 : index
    %c0_28 = arith.constant 0 : index
    %41 = vector.load %arg6[%c64, %c0_28] : memref<72x512xf32, #tpu.memory_space<vmem>>, vector<8x512xf32>
    tpu.vector_store %arg6[%c64, %c0_28], %40 {strides = array<i32>} : memref<72x512xf32, #tpu.memory_space<vmem>>, vector<8x512xf32>,
    %c0_29 = arith.constant 0 : index
    %c0_30 = arith.constant 0 : index
    %c0_31 = arith.constant 0 : index
    %42 = vector.load %arg2[%c0_29, %c0_30, %c0_31] : memref<4x8x72xbf16, #tpu.memory_space<vmem>>, vector<1x8x72xbf16>
    %43 = vector.shape_cast %42 : vector<1x8x72xbf16> to vector<8x72xbf16>
    %c0_32 = arith.constant 0 : index
    %c0_33 = arith.constant 0 : index
    %44 = vector.load %arg6[%c0_32, %c0_33] : memref<72x512xf32, #tpu.memory_space<vmem>>, vector<72x512xf32>
    %45 = arith.truncf %44 : vector<72x512xf32> to vector<72x512xbf16>
    %cst = arith.constant dense<0.000000e+00> : vector<8x512xf32>
    %46 = tpu.matmul %43, %45, %cst {dimension_numbers = #tpu.dot_dimension_numbers<[1], [0], [0], [1], [0, 0, 1, 1], [], []>} : vector<8x72xbf16>, vector<72x512xbf16>, vector<8x512xf32> -> vector<8x512xf32>
    %c0_34 = arith.constant 0 : index
    %c0_35 = arith.constant 0 : index
    %c0_36 = arith.constant 0 : index
    %47 = vector.load %arg3[%c0_34, %c0_35, %c0_36] : memref<4x8x1xf32, #tpu.memory_space<vmem>>, vector<1x8x1xf32>
    %48 = vector.shape_cast %47 : vector<1x8x1xf32> to vector<8x1xf32>
    %49 = vector.broadcast %48 : vector<8x1xf32> to vector<8x512xf32>
    %50 = arith.addf %46, %49 : vector<8x512xf32>
    %cst_37 = arith.constant 0.000000e+00 : f32
    %51 = vector.broadcast %cst_37 : f32 to vector<8x512xf32>
    %52 = arith.maximumf %50, %51 : vector<8x512xf32>
    %c17_i32_38 = arith.constant 17 : i32
    %53 = tpu.dynamic_rotate %52 by %c17_i32_38 dim 1 : vector<8x512xf32>, i32 -> vector<8x512xf32>
    %c0_39 = arith.constant 0 : index
    %c0_40 = arith.constant 0 : index
    %c0_41 = arith.constant 0 : index
    %54 = vector.load %arg1[%c0_39, %c0_40, %c0_41] : memref<9x8x512xf32, #tpu.memory_space<vmem>>, vector<1x8x512xf32>
    %55 = vector.shape_cast %54 : vector<1x8x512xf32> to vector<8x512xf32>
    %56 = arith.mulf %53, %55 : vector<8x512xf32>
    %c0_42 = arith.constant 0 : index
    %c0_43 = arith.constant 0 : index
    %57 = vector.load %arg6[%c0_42, %c0_43] : memref<72x512xf32, #tpu.memory_space<vmem>>, vector<8x512xf32>
    tpu.vector_store %arg6[%c0_42, %c0_43], %56 {strides = array<i32>} : memref<72x512xf32, #tpu.memory_space<vmem>>, vector<8x512xf32>,
    %c16_i32_44 = arith.constant 16 : i32
    %58 = tpu.dynamic_rotate %52 by %c16_i32_44 dim 1 : vector<8x512xf32>, i32 -> vector<8x512xf32>
    %c1_45 = arith.constant 1 : index
    %c0_46 = arith.constant 0 : index
    %c0_47 = arith.constant 0 : index
    %59 = vector.load %arg1[%c1_45, %c0_46, %c0_47] : memref<9x8x512xf32, #tpu.memory_space<vmem>>, vector<1x8x512xf32>
    %60 = vector.shape_cast %59 : vector<1x8x512xf32> to vector<8x512xf32>
    %61 = arith.mulf %58, %60 : vector<8x512xf32>
    %c8_48 = arith.constant 8 : index
    %c0_49 = arith.constant 0 : index
    %62 = vector.load %arg6[%c8_48, %c0_49] : memref<72x512xf32, #tpu.memory_space<vmem>>, vector<8x512xf32>
    tpu.vector_store %arg6[%c8_48, %c0_49], %61 {strides = array<i32>} : memref<72x512xf32, #tpu.memory_space<vmem>>, vector<8x512xf32>,
    %c15_i32_50 = arith.constant 15 : i32
    %63 = tpu.dynamic_rotate %52 by %c15_i32_50 dim 1 : vector<8x512xf32>, i32 -> vector<8x512xf32>
    %c2_51 = arith.constant 2 : index
    %c0_52 = arith.constant 0 : index
    %c0_53 = arith.constant 0 : index
    %64 = vector.load %arg1[%c2_51, %c0_52, %c0_53] : memref<9x8x512xf32, #tpu.memory_space<vmem>>, vector<1x8x512xf32>
    %65 = vector.shape_cast %64 : vector<1x8x512xf32> to vector<8x512xf32>
    %66 = arith.mulf %63, %65 : vector<8x512xf32>
    %c16_54 = arith.constant 16 : index
    %c0_55 = arith.constant 0 : index
    %67 = vector.load %arg6[%c16_54, %c0_55] : memref<72x512xf32, #tpu.memory_space<vmem>>, vector<8x512xf32>
    tpu.vector_store %arg6[%c16_54, %c0_55], %66 {strides = array<i32>} : memref<72x512xf32, #tpu.memory_space<vmem>>, vector<8x512xf32>,
    %c1_i32_56 = arith.constant 1 : i32
    %68 = tpu.dynamic_rotate %52 by %c1_i32_56 dim 1 : vector<8x512xf32>, i32 -> vector<8x512xf32>
    %c3_57 = arith.constant 3 : index
    %c0_58 = arith.constant 0 : index
    %c0_59 = arith.constant 0 : index
    %69 = vector.load %arg1[%c3_57, %c0_58, %c0_59] : memref<9x8x512xf32, #tpu.memory_space<vmem>>, vector<1x8x512xf32>
    %70 = vector.shape_cast %69 : vector<1x8x512xf32> to vector<8x512xf32>
    %71 = arith.mulf %68, %70 : vector<8x512xf32>
    %c24_60 = arith.constant 24 : index
    %c0_61 = arith.constant 0 : index
    %72 = vector.load %arg6[%c24_60, %c0_61] : memref<72x512xf32, #tpu.memory_space<vmem>>, vector<8x512xf32>
    tpu.vector_store %arg6[%c24_60, %c0_61], %71 {strides = array<i32>} : memref<72x512xf32, #tpu.memory_space<vmem>>, vector<8x512xf32>,
    %c32_62 = arith.constant 32 : index
    %c0_63 = arith.constant 0 : index
    %73 = vector.load %arg6[%c32_62, %c0_63] : memref<72x512xf32, #tpu.memory_space<vmem>>, vector<8x512xf32>
    tpu.vector_store %arg6[%c32_62, %c0_63], %52 {strides = array<i32>} : memref<72x512xf32, #tpu.memory_space<vmem>>, vector<8x512xf32>,
    %c511_i32_64 = arith.constant 511 : i32
    %74 = tpu.dynamic_rotate %52 by %c511_i32_64 dim 1 : vector<8x512xf32>, i32 -> vector<8x512xf32>
    %c5_65 = arith.constant 5 : index
    %c0_66 = arith.constant 0 : index
    %c0_67 = arith.constant 0 : index
    %75 = vector.load %arg1[%c5_65, %c0_66, %c0_67] : memref<9x8x512xf32, #tpu.memory_space<vmem>>, vector<1x8x512xf32>
    %76 = vector.shape_cast %75 : vector<1x8x512xf32> to vector<8x512xf32>
    %77 = arith.mulf %74, %76 : vector<8x512xf32>
    %c40_68 = arith.constant 40 : index
    %c0_69 = arith.constant 0 : index
    %78 = vector.load %arg6[%c40_68, %c0_69] : memref<72x512xf32, #tpu.memory_space<vmem>>, vector<8x512xf32>
    tpu.vector_store %arg6[%c40_68, %c0_69], %77 {strides = array<i32>} : memref<72x512xf32, #tpu.memory_space<vmem>>, vector<8x512xf32>,
    %c497_i32_70 = arith.constant 497 : i32
    %79 = tpu.dynamic_rotate %52 by %c497_i32_70 dim 1 : vector<8x512xf32>, i32 -> vector<8x512xf32>
    %c6_71 = arith.constant 6 : index
    %c0_72 = arith.constant 0 : index
    %c0_73 = arith.constant 0 : index
    %80 = vector.load %arg1[%c6_71, %c0_72, %c0_73] : memref<9x8x512xf32, #tpu.memory_space<vmem>>, vector<1x8x512xf32>
    %81 = vector.shape_cast %80 : vector<1x8x512xf32> to vector<8x512xf32>
    %82 = arith.mulf %79, %81 : vector<8x512xf32>
    %c48_74 = arith.constant 48 : index
    %c0_75 = arith.constant 0 : index
    %83 = vector.load %arg6[%c48_74, %c0_75] : memref<72x512xf32, #tpu.memory_space<vmem>>, vector<8x512xf32>
    tpu.vector_store %arg6[%c48_74, %c0_75], %82 {strides = array<i32>} : memref<72x512xf32, #tpu.memory_space<vmem>>, vector<8x512xf32>,
    %c496_i32_76 = arith.constant 496 : i32
    %84 = tpu.dynamic_rotate %52 by %c496_i32_76 dim 1 : vector<8x512xf32>, i32 -> vector<8x512xf32>
    %c7_77 = arith.constant 7 : index
    %c0_78 = arith.constant 0 : index
    %c0_79 = arith.constant 0 : index
    %85 = vector.load %arg1[%c7_77, %c0_78, %c0_79] : memref<9x8x512xf32, #tpu.memory_space<vmem>>, vector<1x8x512xf32>
    %86 = vector.shape_cast %85 : vector<1x8x512xf32> to vector<8x512xf32>
    %87 = arith.mulf %84, %86 : vector<8x512xf32>
    %c56_80 = arith.constant 56 : index
    %c0_81 = arith.constant 0 : index
    %88 = vector.load %arg6[%c56_80, %c0_81] : memref<72x512xf32, #tpu.memory_space<vmem>>, vector<8x512xf32>
    tpu.vector_store %arg6[%c56_80, %c0_81], %87 {strides = array<i32>} : memref<72x512xf32, #tpu.memory_space<vmem>>, vector<8x512xf32>,
    %c495_i32_82 = arith.constant 495 : i32
    %89 = tpu.dynamic_rotate %52 by %c495_i32_82 dim 1 : vector<8x512xf32>, i32 -> vector<8x512xf32>
    %c8_83 = arith.constant 8 : index
    %c0_84 = arith.constant 0 : index
    %c0_85 = arith.constant 0 : index
    %90 = vector.load %arg1[%c8_83, %c0_84, %c0_85] : memref<9x8x512xf32, #tpu.memory_space<vmem>>, vector<1x8x512xf32>
    %91 = vector.shape_cast %90 : vector<1x8x512xf32> to vector<8x512xf32>
    %92 = arith.mulf %89, %91 : vector<8x512xf32>
    %c64_86 = arith.constant 64 : index
    %c0_87 = arith.constant 0 : index
    %93 = vector.load %arg6[%c64_86, %c0_87] : memref<72x512xf32, #tpu.memory_space<vmem>>, vector<8x512xf32>
    tpu.vector_store %arg6[%c64_86, %c0_87], %92 {strides = array<i32>} : memref<72x512xf32, #tpu.memory_space<vmem>>, vector<8x512xf32>,
    %c1_88 = arith.constant 1 : index
    %c0_89 = arith.constant 0 : index
    %c0_90 = arith.constant 0 : index
    %94 = vector.load %arg2[%c1_88, %c0_89, %c0_90] : memref<4x8x72xbf16, #tpu.memory_space<vmem>>, vector<1x8x72xbf16>
    %95 = vector.shape_cast %94 : vector<1x8x72xbf16> to vector<8x72xbf16>
    %c0_91 = arith.constant 0 : index
    %c0_92 = arith.constant 0 : index
    %96 = vector.load %arg6[%c0_91, %c0_92] : memref<72x512xf32, #tpu.memory_space<vmem>>, vector<72x512xf32>
    %97 = arith.truncf %96 : vector<72x512xf32> to vector<72x512xbf16>
    %cst_93 = arith.constant dense<0.000000e+00> : vector<8x512xf32>
    %98 = tpu.matmul %95, %97, %cst_93 {dimension_numbers = #tpu.dot_dimension_numbers<[1], [0], [0], [1], [0, 0, 1, 1], [], []>} : vector<8x72xbf16>, vector<72x512xbf16>, vector<8x512xf32> -> vector<8x512xf32>
    %c1_94 = arith.constant 1 : index
    %c0_95 = arith.constant 0 : index
    %c0_96 = arith.constant 0 : index
    %99 = vector.load %arg3[%c1_94, %c0_95, %c0_96] : memref<4x8x1xf32, #tpu.memory_space<vmem>>, vector<1x8x1xf32>
    %100 = vector.shape_cast %99 : vector<1x8x1xf32> to vector<8x1xf32>
    %101 = vector.broadcast %100 : vector<8x1xf32> to vector<8x512xf32>
    %102 = arith.addf %98, %101 : vector<8x512xf32>
    %cst_97 = arith.constant 0.000000e+00 : f32
    %103 = vector.broadcast %cst_97 : f32 to vector<8x512xf32>
    %104 = arith.maximumf %102, %103 : vector<8x512xf32>
    %c17_i32_98 = arith.constant 17 : i32
    %105 = tpu.dynamic_rotate %104 by %c17_i32_98 dim 1 : vector<8x512xf32>, i32 -> vector<8x512xf32>
    %c0_99 = arith.constant 0 : index
    %c0_100 = arith.constant 0 : index
    %c0_101 = arith.constant 0 : index
    %106 = vector.load %arg1[%c0_99, %c0_100, %c0_101] : memref<9x8x512xf32, #tpu.memory_space<vmem>>, vector<1x8x512xf32>
    %107 = vector.shape_cast %106 : vector<1x8x512xf32> to vector<8x512xf32>
    %108 = arith.mulf %105, %107 : vector<8x512xf32>
    %c0_102 = arith.constant 0 : index
    %c0_103 = arith.constant 0 : index
    %109 = vector.load %arg6[%c0_102, %c0_103] : memref<72x512xf32, #tpu.memory_space<vmem>>, vector<8x512xf32>
    tpu.vector_store %arg6[%c0_102, %c0_103], %108 {strides = array<i32>} : memref<72x512xf32, #tpu.memory_space<vmem>>, vector<8x512xf32>,
    %c16_i32_104 = arith.constant 16 : i32
    %110 = tpu.dynamic_rotate %104 by %c16_i32_104 dim 1 : vector<8x512xf32>, i32 -> vector<8x512xf32>
    %c1_105 = arith.constant 1 : index
    %c0_106 = arith.constant 0 : index
    %c0_107 = arith.constant 0 : index
    %111 = vector.load %arg1[%c1_105, %c0_106, %c0_107] : memref<9x8x512xf32, #tpu.memory_space<vmem>>, vector<1x8x512xf32>
    %112 = vector.shape_cast %111 : vector<1x8x512xf32> to vector<8x512xf32>
    %113 = arith.mulf %110, %112 : vector<8x512xf32>
    %c8_108 = arith.constant 8 : index
    %c0_109 = arith.constant 0 : index
    %114 = vector.load %arg6[%c8_108, %c0_109] : memref<72x512xf32, #tpu.memory_space<vmem>>, vector<8x512xf32>
    tpu.vector_store %arg6[%c8_108, %c0_109], %113 {strides = array<i32>} : memref<72x512xf32, #tpu.memory_space<vmem>>, vector<8x512xf32>,
    %c15_i32_110 = arith.constant 15 : i32
    %115 = tpu.dynamic_rotate %104 by %c15_i32_110 dim 1 : vector<8x512xf32>, i32 -> vector<8x512xf32>
    %c2_111 = arith.constant 2 : index
    %c0_112 = arith.constant 0 : index
    %c0_113 = arith.constant 0 : index
    %116 = vector.load %arg1[%c2_111, %c0_112, %c0_113] : memref<9x8x512xf32, #tpu.memory_space<vmem>>, vector<1x8x512xf32>
    %117 = vector.shape_cast %116 : vector<1x8x512xf32> to vector<8x512xf32>
    %118 = arith.mulf %115, %117 : vector<8x512xf32>
    %c16_114 = arith.constant 16 : index
    %c0_115 = arith.constant 0 : index
    %119 = vector.load %arg6[%c16_114, %c0_115] : memref<72x512xf32, #tpu.memory_space<vmem>>, vector<8x512xf32>
    tpu.vector_store %arg6[%c16_114, %c0_115], %118 {strides = array<i32>} : memref<72x512xf32, #tpu.memory_space<vmem>>, vector<8x512xf32>,
    %c1_i32_116 = arith.constant 1 : i32
    %120 = tpu.dynamic_rotate %104 by %c1_i32_116 dim 1 : vector<8x512xf32>, i32 -> vector<8x512xf32>
    %c3_117 = arith.constant 3 : index
    %c0_118 = arith.constant 0 : index
    %c0_119 = arith.constant 0 : index
    %121 = vector.load %arg1[%c3_117, %c0_118, %c0_119] : memref<9x8x512xf32, #tpu.memory_space<vmem>>, vector<1x8x512xf32>
    %122 = vector.shape_cast %121 : vector<1x8x512xf32> to vector<8x512xf32>
    %123 = arith.mulf %120, %122 : vector<8x512xf32>
    %c24_120 = arith.constant 24 : index
    %c0_121 = arith.constant 0 : index
    %124 = vector.load %arg6[%c24_120, %c0_121] : memref<72x512xf32, #tpu.memory_space<vmem>>, vector<8x512xf32>
    tpu.vector_store %arg6[%c24_120, %c0_121], %123 {strides = array<i32>} : memref<72x512xf32, #tpu.memory_space<vmem>>, vector<8x512xf32>,
    %c32_122 = arith.constant 32 : index
    %c0_123 = arith.constant 0 : index
    %125 = vector.load %arg6[%c32_122, %c0_123] : memref<72x512xf32, #tpu.memory_space<vmem>>, vector<8x512xf32>
    tpu.vector_store %arg6[%c32_122, %c0_123], %104 {strides = array<i32>} : memref<72x512xf32, #tpu.memory_space<vmem>>, vector<8x512xf32>,
    %c511_i32_124 = arith.constant 511 : i32
    %126 = tpu.dynamic_rotate %104 by %c511_i32_124 dim 1 : vector<8x512xf32>, i32 -> vector<8x512xf32>
    %c5_125 = arith.constant 5 : index
    %c0_126 = arith.constant 0 : index
    %c0_127 = arith.constant 0 : index
    %127 = vector.load %arg1[%c5_125, %c0_126, %c0_127] : memref<9x8x512xf32, #tpu.memory_space<vmem>>, vector<1x8x512xf32>
    %128 = vector.shape_cast %127 : vector<1x8x512xf32> to vector<8x512xf32>
    %129 = arith.mulf %126, %128 : vector<8x512xf32>
    %c40_128 = arith.constant 40 : index
    %c0_129 = arith.constant 0 : index
    %130 = vector.load %arg6[%c40_128, %c0_129] : memref<72x512xf32, #tpu.memory_space<vmem>>, vector<8x512xf32>
    tpu.vector_store %arg6[%c40_128, %c0_129], %129 {strides = array<i32>} : memref<72x512xf32, #tpu.memory_space<vmem>>, vector<8x512xf32>,
    %c497_i32_130 = arith.constant 497 : i32
    %131 = tpu.dynamic_rotate %104 by %c497_i32_130 dim 1 : vector<8x512xf32>, i32 -> vector<8x512xf32>
    %c6_131 = arith.constant 6 : index
    %c0_132 = arith.constant 0 : index
    %c0_133 = arith.constant 0 : index
    %132 = vector.load %arg1[%c6_131, %c0_132, %c0_133] : memref<9x8x512xf32, #tpu.memory_space<vmem>>, vector<1x8x512xf32>
    %133 = vector.shape_cast %132 : vector<1x8x512xf32> to vector<8x512xf32>
    %134 = arith.mulf %131, %133 : vector<8x512xf32>
    %c48_134 = arith.constant 48 : index
    %c0_135 = arith.constant 0 : index
    %135 = vector.load %arg6[%c48_134, %c0_135] : memref<72x512xf32, #tpu.memory_space<vmem>>, vector<8x512xf32>
    tpu.vector_store %arg6[%c48_134, %c0_135], %134 {strides = array<i32>} : memref<72x512xf32, #tpu.memory_space<vmem>>, vector<8x512xf32>,
    %c496_i32_136 = arith.constant 496 : i32
    %136 = tpu.dynamic_rotate %104 by %c496_i32_136 dim 1 : vector<8x512xf32>, i32 -> vector<8x512xf32>
    %c7_137 = arith.constant 7 : index
    %c0_138 = arith.constant 0 : index
    %c0_139 = arith.constant 0 : index
    %137 = vector.load %arg1[%c7_137, %c0_138, %c0_139] : memref<9x8x512xf32, #tpu.memory_space<vmem>>, vector<1x8x512xf32>
    %138 = vector.shape_cast %137 : vector<1x8x512xf32> to vector<8x512xf32>
    %139 = arith.mulf %136, %138 : vector<8x512xf32>
    %c56_140 = arith.constant 56 : index
    %c0_141 = arith.constant 0 : index
    %140 = vector.load %arg6[%c56_140, %c0_141] : memref<72x512xf32, #tpu.memory_space<vmem>>, vector<8x512xf32>
    tpu.vector_store %arg6[%c56_140, %c0_141], %139 {strides = array<i32>} : memref<72x512xf32, #tpu.memory_space<vmem>>, vector<8x512xf32>,
    %c495_i32_142 = arith.constant 495 : i32
    %141 = tpu.dynamic_rotate %104 by %c495_i32_142 dim 1 : vector<8x512xf32>, i32 -> vector<8x512xf32>
    %c8_143 = arith.constant 8 : index
    %c0_144 = arith.constant 0 : index
    %c0_145 = arith.constant 0 : index
    %142 = vector.load %arg1[%c8_143, %c0_144, %c0_145] : memref<9x8x512xf32, #tpu.memory_space<vmem>>, vector<1x8x512xf32>
    %143 = vector.shape_cast %142 : vector<1x8x512xf32> to vector<8x512xf32>
    %144 = arith.mulf %141, %143 : vector<8x512xf32>
    %c64_146 = arith.constant 64 : index
    %c0_147 = arith.constant 0 : index
    %145 = vector.load %arg6[%c64_146, %c0_147] : memref<72x512xf32, #tpu.memory_space<vmem>>, vector<8x512xf32>
    tpu.vector_store %arg6[%c64_146, %c0_147], %144 {strides = array<i32>} : memref<72x512xf32, #tpu.memory_space<vmem>>, vector<8x512xf32>,
    %c2_148 = arith.constant 2 : index
    %c0_149 = arith.constant 0 : index
    %c0_150 = arith.constant 0 : index
    %146 = vector.load %arg2[%c2_148, %c0_149, %c0_150] : memref<4x8x72xbf16, #tpu.memory_space<vmem>>, vector<1x8x72xbf16>
    %147 = vector.shape_cast %146 : vector<1x8x72xbf16> to vector<8x72xbf16>
    %c0_151 = arith.constant 0 : index
    %c0_152 = arith.constant 0 : index
    %148 = vector.load %arg6[%c0_151, %c0_152] : memref<72x512xf32, #tpu.memory_space<vmem>>, vector<72x512xf32>
    %149 = arith.truncf %148 : vector<72x512xf32> to vector<72x512xbf16>
    %cst_153 = arith.constant dense<0.000000e+00> : vector<8x512xf32>
    %150 = tpu.matmul %147, %149, %cst_153 {dimension_numbers = #tpu.dot_dimension_numbers<[1], [0], [0], [1], [0, 0, 1, 1], [], []>} : vector<8x72xbf16>, vector<72x512xbf16>, vector<8x512xf32> -> vector<8x512xf32>
    %c2_154 = arith.constant 2 : index
    %c0_155 = arith.constant 0 : index
    %c0_156 = arith.constant 0 : index
    %151 = vector.load %arg3[%c2_154, %c0_155, %c0_156] : memref<4x8x1xf32, #tpu.memory_space<vmem>>, vector<1x8x1xf32>
    %152 = vector.shape_cast %151 : vector<1x8x1xf32> to vector<8x1xf32>
    %153 = vector.broadcast %152 : vector<8x1xf32> to vector<8x512xf32>
    %154 = arith.addf %150, %153 : vector<8x512xf32>
    %cst_157 = arith.constant 0.000000e+00 : f32
    %155 = vector.broadcast %cst_157 : f32 to vector<8x512xf32>
    %156 = arith.maximumf %154, %155 : vector<8x512xf32>
    %c17_i32_158 = arith.constant 17 : i32
    %157 = tpu.dynamic_rotate %156 by %c17_i32_158 dim 1 : vector<8x512xf32>, i32 -> vector<8x512xf32>
    %c0_159 = arith.constant 0 : index
    %c0_160 = arith.constant 0 : index
    %c0_161 = arith.constant 0 : index
    %158 = vector.load %arg1[%c0_159, %c0_160, %c0_161] : memref<9x8x512xf32, #tpu.memory_space<vmem>>, vector<1x8x512xf32>
    %159 = vector.shape_cast %158 : vector<1x8x512xf32> to vector<8x512xf32>
    %160 = arith.mulf %157, %159 : vector<8x512xf32>
    %c0_162 = arith.constant 0 : index
    %c0_163 = arith.constant 0 : index
    %161 = vector.load %arg6[%c0_162, %c0_163] : memref<72x512xf32, #tpu.memory_space<vmem>>, vector<8x512xf32>
    tpu.vector_store %arg6[%c0_162, %c0_163], %160 {strides = array<i32>} : memref<72x512xf32, #tpu.memory_space<vmem>>, vector<8x512xf32>,
    %c16_i32_164 = arith.constant 16 : i32
    %162 = tpu.dynamic_rotate %156 by %c16_i32_164 dim 1 : vector<8x512xf32>, i32 -> vector<8x512xf32>
    %c1_165 = arith.constant 1 : index
    %c0_166 = arith.constant 0 : index
    %c0_167 = arith.constant 0 : index
    %163 = vector.load %arg1[%c1_165, %c0_166, %c0_167] : memref<9x8x512xf32, #tpu.memory_space<vmem>>, vector<1x8x512xf32>
    %164 = vector.shape_cast %163 : vector<1x8x512xf32> to vector<8x512xf32>
    %165 = arith.mulf %162, %164 : vector<8x512xf32>
    %c8_168 = arith.constant 8 : index
    %c0_169 = arith.constant 0 : index
    %166 = vector.load %arg6[%c8_168, %c0_169] : memref<72x512xf32, #tpu.memory_space<vmem>>, vector<8x512xf32>
    tpu.vector_store %arg6[%c8_168, %c0_169], %165 {strides = array<i32>} : memref<72x512xf32, #tpu.memory_space<vmem>>, vector<8x512xf32>,
    %c15_i32_170 = arith.constant 15 : i32
    %167 = tpu.dynamic_rotate %156 by %c15_i32_170 dim 1 : vector<8x512xf32>, i32 -> vector<8x512xf32>
    %c2_171 = arith.constant 2 : index
    %c0_172 = arith.constant 0 : index
    %c0_173 = arith.constant 0 : index
    %168 = vector.load %arg1[%c2_171, %c0_172, %c0_173] : memref<9x8x512xf32, #tpu.memory_space<vmem>>, vector<1x8x512xf32>
    %169 = vector.shape_cast %168 : vector<1x8x512xf32> to vector<8x512xf32>
    %170 = arith.mulf %167, %169 : vector<8x512xf32>
    %c16_174 = arith.constant 16 : index
    %c0_175 = arith.constant 0 : index
    %171 = vector.load %arg6[%c16_174, %c0_175] : memref<72x512xf32, #tpu.memory_space<vmem>>, vector<8x512xf32>
    tpu.vector_store %arg6[%c16_174, %c0_175], %170 {strides = array<i32>} : memref<72x512xf32, #tpu.memory_space<vmem>>, vector<8x512xf32>,
    %c1_i32_176 = arith.constant 1 : i32
    %172 = tpu.dynamic_rotate %156 by %c1_i32_176 dim 1 : vector<8x512xf32>, i32 -> vector<8x512xf32>
    %c3_177 = arith.constant 3 : index
    %c0_178 = arith.constant 0 : index
    %c0_179 = arith.constant 0 : index
    %173 = vector.load %arg1[%c3_177, %c0_178, %c0_179] : memref<9x8x512xf32, #tpu.memory_space<vmem>>, vector<1x8x512xf32>
    %174 = vector.shape_cast %173 : vector<1x8x512xf32> to vector<8x512xf32>
    %175 = arith.mulf %172, %174 : vector<8x512xf32>
    %c24_180 = arith.constant 24 : index
    %c0_181 = arith.constant 0 : index
    %176 = vector.load %arg6[%c24_180, %c0_181] : memref<72x512xf32, #tpu.memory_space<vmem>>, vector<8x512xf32>
    tpu.vector_store %arg6[%c24_180, %c0_181], %175 {strides = array<i32>} : memref<72x512xf32, #tpu.memory_space<vmem>>, vector<8x512xf32>,
    %c32_182 = arith.constant 32 : index
    %c0_183 = arith.constant 0 : index
    %177 = vector.load %arg6[%c32_182, %c0_183] : memref<72x512xf32, #tpu.memory_space<vmem>>, vector<8x512xf32>
    tpu.vector_store %arg6[%c32_182, %c0_183], %156 {strides = array<i32>} : memref<72x512xf32, #tpu.memory_space<vmem>>, vector<8x512xf32>,
    %c511_i32_184 = arith.constant 511 : i32
    %178 = tpu.dynamic_rotate %156 by %c511_i32_184 dim 1 : vector<8x512xf32>, i32 -> vector<8x512xf32>
    %c5_185 = arith.constant 5 : index
    %c0_186 = arith.constant 0 : index
    %c0_187 = arith.constant 0 : index
    %179 = vector.load %arg1[%c5_185, %c0_186, %c0_187] : memref<9x8x512xf32, #tpu.memory_space<vmem>>, vector<1x8x512xf32>
    %180 = vector.shape_cast %179 : vector<1x8x512xf32> to vector<8x512xf32>
    %181 = arith.mulf %178, %180 : vector<8x512xf32>
    %c40_188 = arith.constant 40 : index
    %c0_189 = arith.constant 0 : index
    %182 = vector.load %arg6[%c40_188, %c0_189] : memref<72x512xf32, #tpu.memory_space<vmem>>, vector<8x512xf32>
    tpu.vector_store %arg6[%c40_188, %c0_189], %181 {strides = array<i32>} : memref<72x512xf32, #tpu.memory_space<vmem>>, vector<8x512xf32>,
    %c497_i32_190 = arith.constant 497 : i32
    %183 = tpu.dynamic_rotate %156 by %c497_i32_190 dim 1 : vector<8x512xf32>, i32 -> vector<8x512xf32>
    %c6_191 = arith.constant 6 : index
    %c0_192 = arith.constant 0 : index
    %c0_193 = arith.constant 0 : index
    %184 = vector.load %arg1[%c6_191, %c0_192, %c0_193] : memref<9x8x512xf32, #tpu.memory_space<vmem>>, vector<1x8x512xf32>
    %185 = vector.shape_cast %184 : vector<1x8x512xf32> to vector<8x512xf32>
    %186 = arith.mulf %183, %185 : vector<8x512xf32>
    %c48_194 = arith.constant 48 : index
    %c0_195 = arith.constant 0 : index
    %187 = vector.load %arg6[%c48_194, %c0_195] : memref<72x512xf32, #tpu.memory_space<vmem>>, vector<8x512xf32>
    tpu.vector_store %arg6[%c48_194, %c0_195], %186 {strides = array<i32>} : memref<72x512xf32, #tpu.memory_space<vmem>>, vector<8x512xf32>,
    %c496_i32_196 = arith.constant 496 : i32
    %188 = tpu.dynamic_rotate %156 by %c496_i32_196 dim 1 : vector<8x512xf32>, i32 -> vector<8x512xf32>
    %c7_197 = arith.constant 7 : index
    %c0_198 = arith.constant 0 : index
    %c0_199 = arith.constant 0 : index
    %189 = vector.load %arg1[%c7_197, %c0_198, %c0_199] : memref<9x8x512xf32, #tpu.memory_space<vmem>>, vector<1x8x512xf32>
    %190 = vector.shape_cast %189 : vector<1x8x512xf32> to vector<8x512xf32>
    %191 = arith.mulf %188, %190 : vector<8x512xf32>
    %c56_200 = arith.constant 56 : index
    %c0_201 = arith.constant 0 : index
    %192 = vector.load %arg6[%c56_200, %c0_201] : memref<72x512xf32, #tpu.memory_space<vmem>>, vector<8x512xf32>
    tpu.vector_store %arg6[%c56_200, %c0_201], %191 {strides = array<i32>} : memref<72x512xf32, #tpu.memory_space<vmem>>, vector<8x512xf32>,
    %c495_i32_202 = arith.constant 495 : i32
    %193 = tpu.dynamic_rotate %156 by %c495_i32_202 dim 1 : vector<8x512xf32>, i32 -> vector<8x512xf32>
    %c8_203 = arith.constant 8 : index
    %c0_204 = arith.constant 0 : index
    %c0_205 = arith.constant 0 : index
    %194 = vector.load %arg1[%c8_203, %c0_204, %c0_205] : memref<9x8x512xf32, #tpu.memory_space<vmem>>, vector<1x8x512xf32>
    %195 = vector.shape_cast %194 : vector<1x8x512xf32> to vector<8x512xf32>
    %196 = arith.mulf %193, %195 : vector<8x512xf32>
    %c64_206 = arith.constant 64 : index
    %c0_207 = arith.constant 0 : index
    %197 = vector.load %arg6[%c64_206, %c0_207] : memref<72x512xf32, #tpu.memory_space<vmem>>, vector<8x512xf32>
    tpu.vector_store %arg6[%c64_206, %c0_207], %196 {strides = array<i32>} : memref<72x512xf32, #tpu.memory_space<vmem>>, vector<8x512xf32>,
    %c3_208 = arith.constant 3 : index
    %c0_209 = arith.constant 0 : index
    %c0_210 = arith.constant 0 : index
    %198 = vector.load %arg2[%c3_208, %c0_209, %c0_210] : memref<4x8x72xbf16, #tpu.memory_space<vmem>>, vector<1x8x72xbf16>
    %199 = vector.shape_cast %198 : vector<1x8x72xbf16> to vector<8x72xbf16>
    %c0_211 = arith.constant 0 : index
    %c0_212 = arith.constant 0 : index
    %200 = vector.load %arg6[%c0_211, %c0_212] : memref<72x512xf32, #tpu.memory_space<vmem>>, vector<72x512xf32>
    %201 = arith.truncf %200 : vector<72x512xf32> to vector<72x512xbf16>
    %cst_213 = arith.constant dense<0.000000e+00> : vector<8x512xf32>
    %202 = tpu.matmul %199, %201, %cst_213 {dimension_numbers = #tpu.dot_dimension_numbers<[1], [0], [0], [1], [0, 0, 1, 1], [], []>} : vector<8x72xbf16>, vector<72x512xbf16>, vector<8x512xf32> -> vector<8x512xf32>
    %c3_214 = arith.constant 3 : index
    %c0_215 = arith.constant 0 : index
    %c0_216 = arith.constant 0 : index
    %203 = vector.load %arg3[%c3_214, %c0_215, %c0_216] : memref<4x8x1xf32, #tpu.memory_space<vmem>>, vector<1x8x1xf32>
    %204 = vector.shape_cast %203 : vector<1x8x1xf32> to vector<8x1xf32>
    %205 = vector.broadcast %204 : vector<8x1xf32> to vector<8x512xf32>
    %206 = arith.addf %202, %205 : vector<8x512xf32>
    %cst_217 = arith.constant 0.000000e+00 : f32
    %207 = vector.broadcast %cst_217 : f32 to vector<8x512xf32>
    %208 = arith.maximumf %206, %207 : vector<8x512xf32>
    %c0_218 = arith.constant 0 : index
    %c0_219 = arith.constant 0 : index
    %209 = vector.load %arg0[%c0_218, %c0_219] : memref<8x512xf32, #tpu.memory_space<vmem>>, vector<8x512xf32>
    %210 = arith.addf %208, %209 : vector<8x512xf32>
    %c0_220 = arith.constant 0 : index
    %c0_221 = arith.constant 0 : index
    %211 = vector.load %arg4[%c0_220, %c0_221] : memref<8x1xf32, #tpu.memory_space<vmem>>, vector<8x1xf32>
    %212 = vector.broadcast %211 : vector<8x1xf32> to vector<8x512xf32>
    %213 = arith.mulf %210, %212 : vector<8x512xf32>
    %cst_222 = arith.constant dense<0.000000e+00> : vector<512xf32>
    %214 = vector.multi_reduction <add>, %213, %cst_222 [0] : vector<8x512xf32> to vector<512xf32>
    %215 = vector.shape_cast %214 : vector<512xf32> to vector<1x512xf32>
    %216 = arith.negf %215 : vector<1x512xf32>
    %217 = math.exp %216 : vector<1x512xf32>
    %cst_223 = arith.constant 1.000000e+00 : f32
    %218 = vector.broadcast %cst_223 : f32 to vector<1x512xf32>
    %219 = arith.addf %218, %217 : vector<1x512xf32>
    %220 = arith.divf %218, %219 : vector<1x512xf32>
    %c0_224 = arith.constant 0 : index
    %c0_225 = arith.constant 0 : index
    %221 = vector.load %arg5[%c0_224, %c0_225] : memref<1x512xf32, #tpu.memory_space<vmem>>, vector<1x512xf32>
    tpu.vector_store %arg5[%c0_224, %c0_225], %220 {strides = array<i32>} : memref<1x512xf32, #tpu.memory_space<vmem>>, vector<1x512xf32>,
    return
  }
}

</mosaic_0001>

<bundles_post_ra>
// kernel: lidc_i2a_atter.1
= control target key start
LH: loop header
LB: loop body
LE: loop exit
PB: predicated region body
PF: predicated region fallthrough
CT: control target
= control target key end

     0   :  { %s1760_s22 = smov 111   ;;  %s1761_s27 = smov 113   ;;  %v1767_v4 = vmov 0   ;;  %v33_v6 = vlaneseq  ;;  %vm305_vm1 = vcmask 1043456   ;;  %vm301_vm9 = vcmask 588800   ;;  %s2813_s0 = inlined_call_operand.vmem [shape: f32[8,512], index: 0, kind: input, shape index: {}]   ;;  %s2814_s3 = inlined_call_operand.vmem [shape: f32[4,8,1], index: 3, kind: input, shape index: {}]   ;;  %s2815_s1 = inlined_call_operand.vmem [shape: f32[9,8,512], index: 1, kind: input, shape index: {}]   ;;  %s2816_s2 = inlined_call_operand.vmem [shape: bf16[4,8,72], index: 2, kind: input, shape index: {}]   ;;  %s2817_s4 = inlined_call_operand.vmem [shape: f32[8,1], index: 4, kind: input, shape index: {}]   ;;  %s2818_s5 = inlined_call_operand.vmem [shape: f32[1,512], index: 5, kind: output, shape index: {}]  }
   0x1   :  { %v1803_v0 = vld [vmem:[%s2813_s0 + $0x10] sm:$0xff]  ;;  %v1808_v1 = vld [vmem:[%s2813_s0] sm:$0xff]  ;;  %v1817_v2 = vld [vmem:[%s2813_s0 + $0x18] sm:$0xff]  ;;  %s1762_s28 = smov 112   ;;  %s1763_s29 = smov 127   ;;  %350 = vmatprep.mubr.bf16.mxu0 %v1767_v4  ;;  %391 = vmatprep.mubr.bf16.mxu1 %v1767_v4 }
   0x2   :  { %216 = vrot.lane.b32.xlu1 %v1803_v0, %s1760_s22  ;;  %212 = vrot.lane.b32.xlu0 %v1808_v1, %s1760_s22  ;;  %v1822_v3 = vld [vmem:[%s2813_s0 + $0x8] sm:$0xff]  ;;  %s1764_s30 = smov 15   ;;  %s1765_s6 = smov 1   ;;  %v295_v5 = vld [vmem:[%s2814_s3] sm:$0xff]  ;;  %v1892_v7 = vand.u32 127, %v33_v6  ;;  %vm1587_vm10 = vcmp.lt.s32.totalorder %v33_v6, 512 }
   0x3   :  { %s1766_s7 = smov 17   ;;  %1742 = vset.pattern.permute.xlu0 %v1767_v4  ;;  %1743 = vset.pattern.permute.xlu1 %v1767_v4  ;;  %s1768_s8 = smov 16   ;;  %v1898_v10 = vld [vmem:[%s2815_s1 + $0x108] sm:$0xff]  ;;  %v1903_v11 = vld [vmem:[%s2815_s1 + $0x118] sm:$0xff]  ;;  %v1908_v12 = vld [vmem:[%s2815_s1 + $0x100] sm:$0xff] }
   0x4   :  { %vm220_vm0 = vcmp.lt.s32.totalorder %v1892_v7, 111  ;;  %v1913_v13 = vld [vmem:[%s2815_s1 + $0x110] sm:$0xff]  ;;  %vm194_vm2 = vcmp.lt.s32.totalorder %v1892_v7, 112  ;;  %vm168_vm3 = vcmp.lt.s32.totalorder %v1892_v7, 113  ;;  %v1936_v36 = vld [vmem:[%s2815_s1 + $0xd8] sm:$0xff]  ;;  %v1943_v38 = vld [vmem:[%s2815_s1 + $0xc8] sm:$0xff] }
   0x5   :  { %v1950_v40 = vld [vmem:[%s2815_s1 + $0xd0] sm:$0xff]  ;;  %v1955_v41 = vld [vmem:[%s2815_s1 + $0xe0] sm:$0xff]  ;;  %v1964_v44 = vld [vmem:[%s2815_s1 + $0xf8] sm:$0xff]  ;;  %vm142_vm4 = vcmp.lt.s32.totalorder %v1892_v7, 127  ;;  %vm86_vm5 = vcmp.lt.s32.totalorder %v1892_v7, 15  ;;  %vm112_vm6 = vcmp.lt.s32.totalorder %v1892_v7, 1 }
   0x6   :  { %218 = vrot.lane.b32.xlu1 %v1817_v2, %s1760_s22  ;;  %214 = vrot.lane.b32.xlu0 %v1822_v3, %s1760_s22  ;;  %v1969_v45 = vld [vmem:[%s2815_s1 + $0xe8] sm:$0xff]  ;;  %v1974_v46 = vld [vmem:[%s2815_s1 + $0xf0] sm:$0xff]  ;;  %vm35_vm7 = vcmp.lt.s32.totalorder %v1892_v7, 17  ;;  %vm60_vm8 = vcmp.lt.s32.totalorder %v1892_v7, 16 }
   0x7   :  { %v1979_v47 = vld [vmem:[%s2815_s1 + $0xc0] sm:$0xff] }
   0xa   :  { %162 = vrot.lane.b32.xlu1 %v1822_v3, %s1761_s27  ;;  %160 = vrot.lane.b32.xlu0 %v1808_v1, %s1761_s27 }
   0xe   :  { %166 = vrot.lane.b32.xlu1 %v1817_v2, %s1761_s27  ;;  %164 = vrot.lane.b32.xlu0 %v1803_v0, %s1761_s27 }
  0x12   :  { %188 = vrot.lane.b32.xlu1 %v1822_v3, %s1762_s28  ;;  %186 = vrot.lane.b32.xlu0 %v1808_v1, %s1762_s28 }
  0x16   :  { %192 = vrot.lane.b32.xlu1 %v1817_v2, %s1762_s28  ;;  %190 = vrot.lane.b32.xlu0 %v1803_v0, %s1762_s28 }
  0x1a   :  { %136 = vrot.lane.b32.xlu1 %v1822_v3, %s1763_s29  ;;  %134 = vrot.lane.b32.xlu0 %v1808_v1, %s1763_s29 }
  0x1e   :  { %140 = vrot.lane.b32.xlu1 %v1817_v2, %s1763_s29  ;;  %138 = vrot.lane.b32.xlu0 %v1803_v0, %s1763_s29 }
  0x22   :  { %80 = vrot.lane.b32.xlu1 %v1822_v3, %s1764_s30  ;;  %78 = vrot.lane.b32.xlu0 %v1808_v1, %s1764_s30 }
  0x26   :  { %84 = vrot.lane.b32.xlu1 %v1817_v2, %s1764_s30  ;;  %82 = vrot.lane.b32.xlu0 %v1803_v0, %s1764_s30 }
  0x2a   :  { %106 = vrot.lane.b32.xlu1 %v1822_v3, %s1765_s6  ;;  %104 = vrot.lane.b32.xlu0 %v1808_v1, %s1765_s6 }
  0x2e   :  { %110 = vrot.lane.b32.xlu1 %v1817_v2, %s1765_s6  ;;  %108 = vrot.lane.b32.xlu0 %v1803_v0, %s1765_s6 }
  0x32   :  { %27 = vrot.lane.b32.xlu1 %v1822_v3, %s1766_s7  ;;  %25 = vrot.lane.b32.xlu0 %v1808_v1, %s1766_s7 }
  0x36   :  { %31 = vrot.lane.b32.xlu1 %v1817_v2, %s1766_s7  ;;  %29 = vrot.lane.b32.xlu0 %v1803_v0, %s1766_s7 }
  0x3a   :  { %54 = vrot.lane.b32.xlu1 %v1822_v3, %s1768_s8  ;;  %52 = vrot.lane.b32.xlu0 %v1808_v1, %s1768_s8 }
  0x3e   :  { %58 = vrot.lane.b32.xlu1 %v1817_v2, %s1768_s8  ;;  %56 = vrot.lane.b32.xlu0 %v1803_v0, %s1768_s8 }
  0x42   :  { %298 = vperm.xlu0 %1742, %v295_v5  }
  0x74   :  { %v217_v8 = vpop.permute.xlu1 %216  ;;  %v213_v9 = vpop.permute.xlu0 %212 }
  0x78   :  { %v219_v14 = vpop.permute.xlu1 %218  ;;  %v215_v15 = vpop.permute.xlu0 %214 }
  0x79   :  { %v221_v16 = vsel %vm220_vm0, %v217_v8, %v219_v14  ;;  %v223_v17 = vsel %vm220_vm0, %v213_v9, %v215_v15  ;;  %v222_v18 = vsel %vm220_vm0, %v215_v15, %v217_v8  ;;  %v224_v19 = vsel %vm220_vm0, %v219_v14, %v213_v9  ;;  %v2001_v15 = vld [vmem:[%s2815_s1 + $0xa0] sm:$0xff] }
  0x7a   :  { %v231_v20 = vmul.f32 %v1898_v10, %v222_v18  ;;  %v233_v21 = vmul.f32 %v1903_v11, %v224_v19  ;;  %v230_v22 = vmul.f32 %v1908_v12, %v223_v17  ;;  %v232_v23 = vmul.f32 %v1913_v13, %v221_v16  ;;  %v2008_v17 = vld [vmem:[%s2815_s1 + $0xb8] sm:$0xff]  ;;  %v2013_v18 = vld [vmem:[%s2815_s1 + $0xa8] sm:$0xff]  ;;  %v2018_v19 = vld [vmem:[%s2815_s1 + $0xb0] sm:$0xff] }
  0x7c   :  { %v163_v24 = vpop.permute.xlu1 %162  ;;  %v161_v25 = vpop.permute.xlu0 %160  ;;  %v292_v26 = vpack.c.bf16 %v231_v20, %v231_v20  ;;  %v294_v27 = vpack.c.bf16 %v233_v21, %v233_v21  ;;  %v291_v28 = vpack.c.bf16 %v230_v22, %v230_v22  ;;  %v293_v29 = vpack.c.bf16 %v232_v23, %v232_v23 }
  0x7d   :  { %v171_v48 = vsel %vm168_vm3, %v161_v25, %v163_v24 }
  0x7e   :  { %1622 = vmatprep.subr.msk.bf16.mxu0 %vm305_vm1, %v292_v26  ;;  %1624 = vmatprep.subr.msk.bf16.mxu1 %vm305_vm1, %v294_v27  ;;  %v307_v30 = vsel %vm305_vm1, %v291_v28, 0  ;;  %v313_v31 = vsel %vm305_vm1, %v293_v29, 0  ;;  %v178_v61 = vmul.f32 %v1979_v47, %v171_v48 }
  0x7f   :  { %325 = vmatpush1.bf16.msra.mxu0 %v307_v30  ;;  %366 = vmatpush1.bf16.msra.mxu1 %v313_v31 }
  0x80   :  { %v167_v32 = vpop.permute.xlu1 %166  ;;  %v165_v33 = vpop.permute.xlu0 %164 }
  0x81   :  { %v172_v37 = vsel %vm168_vm3, %v167_v32, %v161_v25  ;;  %v170_v39 = vsel %vm168_vm3, %v163_v24, %v165_v33  ;;  %v169_v43 = vsel %vm168_vm3, %v165_v33, %v167_v32 }
  0x82   :  { %v181_v49 = vmul.f32 %v1936_v36, %v172_v37  ;;  %v179_v50 = vmul.f32 %v1943_v38, %v170_v39  ;;  %v180_v57 = vmul.f32 %v1950_v40, %v169_v43 }
  0x84   :  { %v189_v34 = vpop.permute.xlu1 %188  ;;  %v187_v35 = vpop.permute.xlu0 %186 }
  0x85   :  { %v197_v42 = vsel %vm194_vm2, %v187_v35, %v189_v34 }
  0x86   :  { %v204_v53 = vmul.f32 %v1955_v41, %v197_v42  ;;  %v2051_v42 = vld [vmem:[%s2815_s1 + $0x40] sm:$0xff] }
  0x88   :  { %v193_v51 = vpop.permute.xlu1 %192  ;;  %v191_v52 = vpop.permute.xlu0 %190  ;;  %v287_v14 = vpack.c.bf16 %v204_v53, %v178_v61 }
  0x89   :  { %v198_v54 = vsel %vm194_vm2, %v193_v51, %v187_v35  ;;  %v195_v55 = vsel %vm194_vm2, %v191_v52, %v193_v51  ;;  %v196_v56 = vsel %vm194_vm2, %v189_v34, %v191_v52  ;;  %v2066_v51 = vld [vmem:[%s2815_s1 + $0x58] sm:$0xff] }
  0x8a   :  { %v207_v58 = vmul.f32 %v1964_v44, %v198_v54  ;;  %v205_v59 = vmul.f32 %v1969_v45, %v196_v56  ;;  %v206_v60 = vmul.f32 %v1974_v46, %v195_v55  ;;  %v2076_v55 = vld [vmem:[%s2815_s1 + $0x60] sm:$0xff]  ;;  %v2081_v56 = vld [vmem:[%s2815_s1 + $0x70] sm:$0xff] }
  0x8c   :  { %v137_v62 = vpop.permute.xlu1 %136  ;;  %v135_v63 = vpop.permute.xlu0 %134  ;;  %v288_v5 = vpack.c.bf16 %v205_v59, %v179_v50  ;;  %v290_v8 = vpack.c.bf16 %v207_v58, %v181_v49  ;;  %v289_v9 = vpack.c.bf16 %v206_v60, %v180_v57  ;;  %v2061_v50 = vld [vmem:[%s2815_s1 + $0x50] sm:$0xff]  ;;  %v2086_v57 = vld [vmem:[%s2815_s1 + $0x78] sm:$0xff] }
  0x8d   :  { %v145_v16 = vsel %vm142_vm4, %v135_v63, %v137_v62 }
  0x8e   :  { %326 = vmatprep.subr.bf16.mxu0 %v288_v5  ;;  %367 = vmatprep.subr.bf16.mxu1 %v290_v8  ;;  %v152_v22 = vmul.f32 %v2001_v15, %v145_v16 }
  0x8f   :  { %327 = vmatpush1.bf16.msra.mxu0 %v287_v14  ;;  %368 = vmatpush1.bf16.msra.mxu1 %v289_v9 }
  0x90   :  { %v141_v20 = vpop.permute.xlu1 %140  ;;  %v139_v21 = vpop.permute.xlu0 %138  ;;  %v283_v34 = vpack.c.bf16 %v152_v22, %v1808_v1  ;;  %v2046_v1 = vld [vmem:[%s2815_s1 + $0x68] sm:$0xff] }
  0x91   :  { %v146_v23 = vsel %vm142_vm4, %v141_v20, %v135_v63  ;;  %v143_v24 = vsel %vm142_vm4, %v139_v21, %v141_v20  ;;  %v144_v25 = vsel %vm142_vm4, %v137_v62, %v139_v21 }
  0x92   :  { %v155_v26 = vmul.f32 %v2008_v17, %v146_v23  ;;  %v153_v27 = vmul.f32 %v2013_v18, %v144_v25  ;;  %v154_v28 = vmul.f32 %v2018_v19, %v143_v24 }
  0x94   :  { %v81_v29 = vpop.permute.xlu1 %80  ;;  %v79_v30 = vpop.permute.xlu0 %78  ;;  %v284_v31 = vpack.c.bf16 %v153_v27, %v1822_v3  ;;  %v286_v32 = vpack.c.bf16 %v155_v26, %v1817_v2  ;;  %v285_v33 = vpack.c.bf16 %v154_v28, %v1803_v0  ;;  %v2039_v3 = vld [vmem:[%s2815_s1 + $0x48] sm:$0xff] }
  0x95   :  { %v89_v0 = vsel %vm86_vm5, %v79_v30, %v81_v29  ;;  %v2105_v28 = vld [vmem:[%s2815_s1 + $0x8] sm:$0xff] }
  0x96   :  { %328 = vmatprep.subr.bf16.mxu0 %v284_v31  ;;  %369 = vmatprep.subr.bf16.mxu1 %v286_v32  ;;  %v97_v49 = vmul.f32 %v2039_v3, %v89_v0  ;;  %v2127_v0 = vld [vmem:[%s2815_s1 + $0x10] sm:$0xff] }
  0x97   :  { %329 = vmatpush1.bf16.msra.mxu0 %v283_v34  ;;  %370 = vmatpush1.bf16.msra.mxu1 %v285_v33  ;;  %v2117_v33 = vld [vmem:[%s2815_s1] sm:$0xff] }
  0x98   :  { %v85_v35 = vpop.permute.xlu1 %84  ;;  %v83_v37 = vpop.permute.xlu0 %82 }
  0x99   :  { %v90_v43 = vsel %vm86_vm5, %v85_v35, %v79_v30  ;;  %v88_v52 = vsel %vm86_vm5, %v81_v29, %v83_v37  ;;  %v87_v54 = vsel %vm86_vm5, %v83_v37, %v85_v35  ;;  %v2112_v30 = vld [vmem:[%s2815_s1 + $0x28] sm:$0xff] }
  0x9a   :  { %v96_v58 = vmul.f32 %v2051_v42, %v90_v43  ;;  %v98_v62 = vmul.f32 %v2061_v50, %v88_v52  ;;  %v99_v9 = vmul.f32 %v2066_v51, %v87_v54  ;;  %v2147_v52 = vld [vmem:[%s2815_s1 + $0x30] sm:$0xff] }
  0x9c   :  { %v107_v2 = vpop.permute.xlu1 %106  ;;  %v105_v39 = vpop.permute.xlu0 %104 }
  0x9d   :  { %v115_v48 = vsel %vm112_vm6, %v105_v39, %v107_v2 }
  0x9e   :  { %v123_v53 = vmul.f32 %v2046_v1, %v115_v48 }
  0xa0   :  { %v111_v59 = vpop.permute.xlu1 %110  ;;  %v109_v60 = vpop.permute.xlu0 %108  ;;  %v280_v61 = vpack.c.bf16 %v123_v53, %v97_v49  ;;  %v2142_v49 = vld [vmem:[%s2815_s1 + $0x20] sm:$0xff]  ;;  %v2152_v53 = vld [vmem:[%s2815_s1 + $0x38] sm:$0xff] }
  0xa1   :  { %v116_v63 = vsel %vm112_vm6, %v111_v59, %v105_v39  ;;  %v113_v5 = vsel %vm112_vm6, %v109_v60, %v111_v59  ;;  %v114_v8 = vsel %vm112_vm6, %v107_v2, %v109_v60  ;;  %v2132_v2 = vld [vmem:[%s2815_s1 + $0x18] sm:$0xff] }
  0xa2   :  { %v122_v14 = vmul.f32 %v2076_v55, %v116_v63  ;;  %v124_v16 = vmul.f32 %v2081_v56, %v114_v8  ;;  %v125_v20 = vmul.f32 %v2086_v57, %v113_v5  ;;  %330 = vmatprep.subr.bf16.mxu0 %v280_v61 }
  0xa4   :  { %v28_v21 = vpop.permute.xlu1 %27  ;;  %v26_v22 = vpop.permute.xlu0 %25  ;;  %v279_v23 = vpack.c.bf16 %v122_v14, %v96_v58  ;;  %v282_v24 = vpack.c.bf16 %v125_v20, %v99_v9  ;;  %v281_v25 = vpack.c.bf16 %v124_v16, %v98_v62 }
  0xa5   :  { %v38_v29 = vsel %vm35_vm7, %v26_v22, %v28_v21 }
  0xa6   :  { %331 = vmatpush1.bf16.msra.mxu0 %v279_v23  ;;  %371 = vmatprep.subr.bf16.mxu1 %v282_v24  ;;  %v45_v37 = vmul.f32 %v2105_v28, %v38_v29  ;;  %v238_v23 = vld [vmem:[%s2816_s2] sm:$0xf] }
  0xa7   :  { %372 = vmatpush1.bf16.msra.mxu1 %v281_v25 }
  0xa8   :  { %v32_v26 = vpop.permute.xlu1 %31  ;;  %v30_v27 = vpop.permute.xlu0 %29 }
  0xa9   :  { %v39_v34 = vsel %vm35_vm7, %v32_v26, %v26_v22  ;;  %v37_v39 = vsel %vm35_vm7, %v28_v21, %v30_v27  ;;  %v36_v48 = vsel %vm35_vm7, %v30_v27, %v32_v26 }
  0xaa   :  { %v44_v54 = vmul.f32 %v2117_v33, %v39_v34  ;;  %v46_v61 = vmul.f32 %v2127_v0, %v37_v39  ;;  %v47_v8 = vmul.f32 %v2132_v2, %v36_v48 }
  0xac   :  { %v55_v31 = vpop.permute.xlu1 %54  ;;  %v53_v32 = vpop.permute.xlu0 %52 }
  0xad   :  { %v63_v35 = vsel %vm60_vm8, %v53_v32, %v55_v31 }
  0xae   :  { %v71_v43 = vmul.f32 %v2112_v30, %v63_v35 }
  0xb0   :  { %v59_v58 = vpop.permute.xlu1 %58  ;;  %v57_v59 = vpop.permute.xlu0 %56  ;;  %v276_v60 = vpack.c.bf16 %v71_v43, %v45_v37 }
  0xb1   :  { %v64_v62 = vsel %vm60_vm8, %v59_v58, %v53_v32  ;;  %v61_v63 = vsel %vm60_vm8, %v57_v59, %v59_v58  ;;  %v62_v5 = vsel %vm60_vm8, %v55_v31, %v57_v59 }
  0xb2   :  { %v70_v9 = vmul.f32 %v2142_v49, %v64_v62  ;;  %v72_v14 = vmul.f32 %v2147_v52, %v62_v5  ;;  %v73_v16 = vmul.f32 %v2152_v53, %v61_v63  ;;  %332 = vmatprep.subr.bf16.mxu0 %v276_v60 }
  0xb4   :  { %v275_v20 = vpack.c.bf16 %v70_v9, %v44_v54  ;;  %v278_v21 = vpack.c.bf16 %v73_v16, %v47_v8  ;;  %v277_v22 = vpack.c.bf16 %v72_v14, %v46_v61  ;;  %v1655_v61 = vld [vmem:[%s2814_s3 + $0x8] sm:$0xff] }
  0xb6   :  { %333 = vmatpush1.bf16.msra.mxu0 %v275_v20  ;;  %373 = vmatprep.subr.bf16.mxu1 %v278_v21 }
  0xb7   :  { %374 = vmatpush1.bf16.msra.mxu1 %v277_v22 }
  0xb9   :  { %1623 = vmatmul.mubr.msk.bf16.vlgmr.msra.gmra.mxu0 %vm301_vm9, %v238_v23 }
  0xba   :  { %1625 = vmatmul.mubr.msk.bf16.vlgmr.msra.gmra.mxu1 %vm301_vm9, %v238_v23  ;;  %712 = vmatprep.mubr.bf16.mxu0 %v1767_v4 }
  0xbb   :  { %753 = vmatprep.mubr.bf16.mxu1 %v1767_v4 }
  0xbd   :  { %v299_v24 = vpop.permute.xlu0 %298 }
 0x179   :  { %v352_v25 = vpop.f32.mrf.mxu0 }
 0x17a   :  { %v353_v26 = vadd.f32 %v352_v25, %v299_v24  ;;  %v393_v27 = vpop.f32.mrf.mxu1 }
 0x17b   :  { %v394_v29 = vadd.f32 %v393_v27, %v299_v24  ;;  %v354_v31 = vpop.f32.mrf.mxu0 }
 0x17c   :  { %v2173_v32 = vmax.f32 %v353_v26, 0.0  ;;  %v355_v34 = vadd.f32 %v354_v31, %v299_v24  ;;  %v395_v35 = vpop.f32.mrf.mxu1 }
 0x17d   :  { %v2175_v37 = vmax.f32 %v394_v29, 0.0  ;;  %v356_v39 = vpop.f32.mrf.mxu0  ;;  %v396_v58 = vadd.f32 %v395_v35, %v299_v24 }
 0x17e   :  { %v397_v43 = vpop.f32.mrf.mxu1  ;;  %576 = vrot.lane.b32.xlu1 %v2173_v32, %s1760_s22  ;;  %v2181_v54 = vmax.f32 %v355_v34, 0.0 }
 0x17f   :  { %v357_v48 = vpop.f32.mrf.mxu0  ;;  %580 = vrot.lane.b32.xlu0 %v2175_v37, %s1760_s22  ;;  %v2187_v60 = vmax.f32 %v396_v58, 0.0 }
 0x180   :  { %v398_v59 = vpop.f32.mrf.mxu1 }
 0x182   :  { %578 = vrot.lane.b32.xlu1 %v2181_v54, %s1760_s22 }
 0x183   :  { %528 = vrot.lane.b32.xlu0 %v2173_v32, %s1761_s27 }
 0x186   :  { %582 = vrot.lane.b32.xlu1 %v2187_v60, %s1760_s22 }
 0x187   :  { %532 = vrot.lane.b32.xlu0 %v2175_v37, %s1761_s27 }
 0x18a   :  { %530 = vrot.lane.b32.xlu1 %v2181_v54, %s1761_s27 }
 0x18b   :  { %552 = vrot.lane.b32.xlu0 %v2173_v32, %s1762_s28 }
 0x18e   :  { %534 = vrot.lane.b32.xlu1 %v2187_v60, %s1761_s27 }
 0x18f   :  { %556 = vrot.lane.b32.xlu0 %v2175_v37, %s1762_s28 }
 0x192   :  { %554 = vrot.lane.b32.xlu1 %v2181_v54, %s1762_s28 }
 0x193   :  { %504 = vrot.lane.b32.xlu0 %v2173_v32, %s1763_s29 }
 0x196   :  { %558 = vrot.lane.b32.xlu1 %v2187_v60, %s1762_s28 }
 0x197   :  { %508 = vrot.lane.b32.xlu0 %v2175_v37, %s1763_s29 }
 0x19a   :  { %506 = vrot.lane.b32.xlu1 %v2181_v54, %s1763_s29 }
 0x19b   :  { %452 = vrot.lane.b32.xlu0 %v2173_v32, %s1764_s30 }
 0x19e   :  { %510 = vrot.lane.b32.xlu1 %v2187_v60, %s1763_s29 }
 0x19f   :  { %456 = vrot.lane.b32.xlu0 %v2175_v37, %s1764_s30 }
 0x1a2   :  { %454 = vrot.lane.b32.xlu1 %v2181_v54, %s1764_s30 }
 0x1a3   :  { %476 = vrot.lane.b32.xlu0 %v2173_v32, %s1765_s6 }
 0x1a6   :  { %458 = vrot.lane.b32.xlu1 %v2187_v60, %s1764_s30 }
 0x1a7   :  { %480 = vrot.lane.b32.xlu0 %v2175_v37, %s1765_s6 }
 0x1aa   :  { %478 = vrot.lane.b32.xlu1 %v2181_v54, %s1765_s6 }
 0x1ab   :  { %404 = vrot.lane.b32.xlu0 %v2173_v32, %s1766_s7 }
 0x1ae   :  { %482 = vrot.lane.b32.xlu1 %v2187_v60, %s1765_s6 }
 0x1af   :  { %408 = vrot.lane.b32.xlu0 %v2175_v37, %s1766_s7 }
 0x1b2   :  { %406 = vrot.lane.b32.xlu1 %v2181_v54, %s1766_s7 }
 0x1b3   :  { %428 = vrot.lane.b32.xlu0 %v2173_v32, %s1768_s8 }
 0x1b6   :  { %410 = vrot.lane.b32.xlu1 %v2187_v60, %s1766_s7 }
 0x1b7   :  { %432 = vrot.lane.b32.xlu0 %v2175_v37, %s1768_s8 }
 0x1ba   :  { %430 = vrot.lane.b32.xlu1 %v2181_v54, %s1768_s8 }
 0x1bb   :  { %662 = vperm.xlu0 %1742, %v1655_v61  }
 0x1be   :  { %434 = vrot.lane.b32.xlu1 %v2187_v60, %s1768_s8 }
 0x1f0   :  { %v577_v62 = vpop.permute.xlu1 %576 }
 0x1f1   :  { %v581_v63 = vpop.permute.xlu0 %580 }
 0x1f4   :  { %v579_v5 = vpop.permute.xlu1 %578 }
 0x1f5   :  { %v585_v8 = vsel %vm220_vm0, %v579_v5, %v581_v63  ;;  %v586_v9 = vsel %vm220_vm0, %v577_v62, %v579_v5  ;;  %v529_v14 = vpop.permute.xlu0 %528 }
 0x1f6   :  { %v592_v16 = vmul.f32 %v1908_v12, %v586_v9  ;;  %v593_v20 = vmul.f32 %v1898_v10, %v585_v8 }
 0x1f8   :  { %v654_v21 = vpack.c.bf16 %v592_v16, %v592_v16  ;;  %v655_v22 = vpack.c.bf16 %v593_v20, %v593_v20  ;;  %v583_v23 = vpop.permute.xlu1 %582 }
 0x1f9   :  { %v584_v24 = vsel %vm220_vm0, %v581_v63, %v583_v23  ;;  %v587_v25 = vsel %vm220_vm0, %v583_v23, %v577_v62  ;;  %v533_v26 = vpop.permute.xlu0 %532 }
 0x1fa   :  { %v594_v27 = vmul.f32 %v1913_v13, %v584_v24  ;;  %v595_v29 = vmul.f32 %v1903_v11, %v587_v25  ;;  %1656 = vmatprep.subr.msk.bf16.mxu0 %vm305_vm1, %v655_v22  ;;  %v669_v31 = vsel %vm305_vm1, %v654_v21, 0 }
 0x1fb   :  { %687 = vmatpush1.bf16.msra.mxu0 %v669_v31 }
 0x1fc   :  { %v656_v34 = vpack.c.bf16 %v594_v27, %v594_v27  ;;  %v657_v35 = vpack.c.bf16 %v595_v29, %v595_v29  ;;  %v531_v39 = vpop.permute.xlu1 %530 }
 0x1fd   :  { %v553_v43 = vpop.permute.xlu0 %552  ;;  %v537_v61 = vsel %vm168_vm3, %v531_v39, %v533_v26  ;;  %v538_v62 = vsel %vm168_vm3, %v529_v14, %v531_v39 }
 0x1fe   :  { %1658 = vmatprep.subr.msk.bf16.mxu1 %vm305_vm1, %v657_v35  ;;  %v675_v48 = vsel %vm305_vm1, %v656_v34, 0  ;;  %v544_v16 = vmul.f32 %v1979_v47, %v538_v62  ;;  %v545_v20 = vmul.f32 %v1943_v38, %v537_v61 }
 0x1ff   :  { %728 = vmatpush1.bf16.msra.mxu1 %v675_v48 }
 0x200   :  { %v535_v58 = vpop.permute.xlu1 %534 }
 0x201   :  { %v557_v59 = vpop.permute.xlu0 %556  ;;  %v536_v23 = vsel %vm168_vm3, %v533_v26, %v535_v58  ;;  %v539_v24 = vsel %vm168_vm3, %v535_v58, %v529_v14 }
 0x202   :  { %v546_v39 = vmul.f32 %v1950_v40, %v536_v23  ;;  %v547_v48 = vmul.f32 %v1936_v36, %v539_v24 }
 0x204   :  { %v555_v63 = vpop.permute.xlu1 %554 }
 0x205   :  { %v561_v5 = vsel %vm194_vm2, %v555_v63, %v557_v59  ;;  %v562_v8 = vsel %vm194_vm2, %v553_v43, %v555_v63  ;;  %v505_v9 = vpop.permute.xlu0 %504 }
 0x206   :  { %v568_v21 = vmul.f32 %v1955_v41, %v562_v8  ;;  %v569_v22 = vmul.f32 %v1969_v45, %v561_v5 }
 0x208   :  { %v650_v25 = vpack.c.bf16 %v568_v21, %v544_v16  ;;  %v559_v27 = vpop.permute.xlu1 %558  ;;  %v651_v29 = vpack.c.bf16 %v569_v22, %v545_v20 }
 0x209   :  { %v560_v31 = vsel %vm194_vm2, %v557_v59, %v559_v27  ;;  %v563_v34 = vsel %vm194_vm2, %v559_v27, %v553_v43  ;;  %v509_v35 = vpop.permute.xlu0 %508 }
 0x20a   :  { %v570_v61 = vmul.f32 %v1974_v46, %v560_v31  ;;  %v571_v26 = vmul.f32 %v1964_v44, %v563_v34  ;;  %688 = vmatprep.subr.bf16.mxu0 %v651_v29 }
 0x20b   :  { %689 = vmatpush1.bf16.msra.mxu0 %v650_v25 }
 0x20c   :  { %v652_v14 = vpack.c.bf16 %v570_v61, %v546_v39  ;;  %v507_v58 = vpop.permute.xlu1 %506  ;;  %v653_v62 = vpack.c.bf16 %v571_v26, %v547_v48 }
 0x20d   :  { %v513_v59 = vsel %vm142_vm4, %v507_v58, %v509_v35  ;;  %v514_v43 = vsel %vm142_vm4, %v505_v9, %v507_v58  ;;  %v453_v63 = vpop.permute.xlu0 %452 }
 0x20e   :  { %v520_v5 = vmul.f32 %v2001_v15, %v514_v43  ;;  %v521_v8 = vmul.f32 %v2013_v18, %v513_v59  ;;  %729 = vmatprep.subr.bf16.mxu1 %v653_v62 }
 0x20f   :  { %730 = vmatpush1.bf16.msra.mxu1 %v652_v14 }
 0x210   :  { %v646_v16 = vpack.c.bf16 %v520_v5, %v2173_v32  ;;  %v511_v20 = vpop.permute.xlu1 %510  ;;  %v647_v21 = vpack.c.bf16 %v521_v8, %v2181_v54 }
 0x211   :  { %v512_v22 = vsel %vm142_vm4, %v509_v35, %v511_v20  ;;  %v515_v23 = vsel %vm142_vm4, %v511_v20, %v505_v9  ;;  %v457_v24 = vpop.permute.xlu0 %456 }
 0x212   :  { %v522_v25 = vmul.f32 %v2018_v19, %v512_v22  ;;  %v523_v27 = vmul.f32 %v2008_v17, %v515_v23  ;;  %690 = vmatprep.subr.bf16.mxu0 %v647_v21 }
 0x213   :  { %691 = vmatpush1.bf16.msra.mxu0 %v646_v16 }
 0x214   :  { %v648_v29 = vpack.c.bf16 %v522_v25, %v2175_v37  ;;  %v455_v31 = vpop.permute.xlu1 %454  ;;  %v649_v32 = vpack.c.bf16 %v523_v27, %v2187_v60 }
 0x215   :  { %v477_v34 = vpop.permute.xlu0 %476  ;;  %v462_v9 = vsel %vm86_vm5, %v453_v63, %v455_v31  ;;  %v461_v62 = vsel %vm86_vm5, %v455_v31, %v457_v24 }
 0x216   :  { %731 = vmatprep.subr.bf16.mxu1 %v649_v32  ;;  %v469_v26 = vmul.f32 %v2039_v3, %v462_v9 }
 0x217   :  { %732 = vmatpush1.bf16.msra.mxu1 %v648_v29 }
 0x218   :  { %v459_v54 = vpop.permute.xlu1 %458 }
 0x219   :  { %v481_v35 = vpop.permute.xlu0 %480  ;;  %v460_v14 = vsel %vm86_vm5, %v457_v24, %v459_v54  ;;  %v463_v58 = vsel %vm86_vm5, %v459_v54, %v453_v63  ;;  %v470_v24 = vmul.f32 %v2061_v50, %v461_v62 }
 0x21a   :  { %v468_v21 = vmul.f32 %v2051_v42, %v463_v58  ;;  %v471_v22 = vmul.f32 %v2066_v51, %v460_v14 }
 0x21c   :  { %v479_v39 = vpop.permute.xlu1 %478 }
 0x21d   :  { %v486_v48 = vsel %vm112_vm6, %v477_v34, %v479_v39  ;;  %v405_v61 = vpop.permute.xlu0 %404  ;;  %v485_v37 = vsel %vm112_vm6, %v479_v39, %v481_v35 }
 0x21e   :  { %v493_v60 = vmul.f32 %v2046_v1, %v486_v48  ;;  %v494_v5 = vmul.f32 %v2081_v56, %v485_v37 }
 0x220   :  { %v483_v59 = vpop.permute.xlu1 %482  ;;  %v643_v43 = vpack.c.bf16 %v493_v60, %v469_v26  ;;  %v644_v31 = vpack.c.bf16 %v494_v5, %v470_v24 }
 0x221   :  { %v484_v8 = vsel %vm112_vm6, %v481_v35, %v483_v59  ;;  %v487_v16 = vsel %vm112_vm6, %v483_v59, %v477_v34  ;;  %v409_v20 = vpop.permute.xlu0 %408 }
 0x222   :  { %v492_v63 = vmul.f32 %v2076_v55, %v487_v16  ;;  %v495_v23 = vmul.f32 %v2086_v57, %v484_v8  ;;  %692 = vmatprep.subr.bf16.mxu0 %v643_v43 }
 0x224   :  { %v642_v25 = vpack.c.bf16 %v492_v63, %v468_v21  ;;  %v407_v27 = vpop.permute.xlu1 %406  ;;  %v645_v29 = vpack.c.bf16 %v495_v23, %v471_v22 }
 0x225   :  { %v429_v32 = vpop.permute.xlu0 %428  ;;  %v414_v54 = vsel %vm35_vm7, %v405_v61, %v407_v27  ;;  %v413_v58 = vsel %vm35_vm7, %v407_v27, %v409_v20 }
 0x226   :  { %693 = vmatpush1.bf16.msra.mxu0 %v642_v25  ;;  %733 = vmatprep.subr.bf16.mxu1 %v645_v29  ;;  %v421_v48 = vmul.f32 %v414_v54, %v2105_v28  ;;  %v1654_v25 = vld [vmem:[%s2816_s2 + $0x4] sm:$0xf] }
 0x227   :  { %734 = vmatpush1.bf16.msra.mxu1 %v644_v31 }
 0x228   :  { %v411_v34 = vpop.permute.xlu1 %410 }
 0x229   :  { %v433_v9 = vpop.permute.xlu0 %432  ;;  %v412_v60 = vsel %vm35_vm7, %v409_v20, %v411_v34  ;;  %v415_v14 = vsel %vm35_vm7, %v411_v34, %v405_v61  ;;  %v422_v20 = vmul.f32 %v413_v58, %v2127_v0 }
 0x22a   :  { %v420_v16 = vmul.f32 %v415_v14, %v2117_v33  ;;  %v423_v21 = vmul.f32 %v412_v60, %v2132_v2 }
 0x22c   :  { %v431_v35 = vpop.permute.xlu1 %430 }
 0x22d   :  { %v438_v39 = vsel %vm60_vm8, %v429_v32, %v431_v35  ;;  %v437_v26 = vsel %vm60_vm8, %v431_v35, %v433_v9 }
 0x22e   :  { %v445_v37 = vmul.f32 %v2112_v30, %v438_v39  ;;  %v446_v43 = vmul.f32 %v2147_v52, %v437_v26 }
 0x230   :  { %v435_v62 = vpop.permute.xlu1 %434  ;;  %v639_v59 = vpack.c.bf16 %v445_v37, %v421_v48  ;;  %v640_v24 = vpack.c.bf16 %v446_v43, %v422_v20  ;;  %v1689_v43 = vld [vmem:[%s2814_s3 + $0x10] sm:$0xff] }
 0x231   :  { %v436_v5 = vsel %vm60_vm8, %v433_v9, %v435_v62  ;;  %v439_v8 = vsel %vm60_vm8, %v435_v62, %v429_v32 }
 0x232   :  { %v444_v22 = vmul.f32 %v2142_v49, %v439_v8  ;;  %v447_v61 = vmul.f32 %v2152_v53, %v436_v5  ;;  %694 = vmatprep.subr.bf16.mxu0 %v639_v59 }
 0x234   :  { %v638_v63 = vpack.c.bf16 %v444_v22, %v420_v16  ;;  %v641_v23 = vpack.c.bf16 %v447_v61, %v423_v21 }
 0x236   :  { %695 = vmatpush1.bf16.msra.mxu0 %v638_v63  ;;  %735 = vmatprep.subr.bf16.mxu1 %v641_v23  ;;  %v663_v27 = vpop.permute.xlu0 %662 }
 0x237   :  { %736 = vmatpush1.bf16.msra.mxu1 %v640_v24 }
 0x239   :  { %1657 = vmatmul.mubr.msk.bf16.vlgmr.msra.gmra.mxu0 %vm301_vm9, %v1654_v25 }
 0x23a   :  { %1659 = vmatmul.mubr.msk.bf16.vlgmr.msra.gmra.mxu1 %vm301_vm9, %v1654_v25  ;;  %1074 = vmatprep.mubr.bf16.mxu0 %v1767_v4 }
 0x23b   :  { %1115 = vmatprep.mubr.bf16.mxu1 %v1767_v4 }
 0x2f9   :  { %v714_v29 = vpop.f32.mrf.mxu0 }
 0x2fa   :  { %v715_v31 = vadd.f32 %v714_v29, %v663_v27  ;;  %v755_v32 = vpop.f32.mrf.mxu1 }
 0x2fb   :  { %v716_v34 = vpop.f32.mrf.mxu0  ;;  %v756_v35 = vadd.f32 %v755_v32, %v663_v27 }
 0x2fc   :  { %v2359_v54 = vmax.f32 %v715_v31, 0.0  ;;  %v717_v9 = vadd.f32 %v716_v34, %v663_v27  ;;  %v757_v39 = vpop.f32.mrf.mxu1 }
 0x2fd   :  { %v718_v48 = vpop.f32.mrf.mxu0  ;;  %v758_v37 = vadd.f32 %v757_v39, %v663_v27  ;;  %v2365_v58 = vmax.f32 %v756_v35, 0.0 }
 0x2fe   :  { %v2361_v26 = vmax.f32 %v717_v9, 0.0  ;;  %938 = vrot.lane.b32.xlu1 %v2359_v54, %s1760_s22  ;;  %v759_v60 = vpop.f32.mrf.mxu1 }
 0x2ff   :  { %v719_v14 = vpop.f32.mrf.mxu0  ;;  %v2369_v59 = vmax.f32 %v758_v37, 0.0 }
 0x300   :  { %940 = vrot.lane.b32.xlu0 %v2361_v26, %s1760_s22  ;;  %v760_v62 = vpop.f32.mrf.mxu1 }
 0x302   :  { %942 = vrot.lane.b32.xlu1 %v2365_v58, %s1760_s22 }
 0x304   :  { %944 = vrot.lane.b32.xlu0 %v2369_v59, %s1760_s22 }
 0x306   :  { %890 = vrot.lane.b32.xlu1 %v2359_v54, %s1761_s27 }
 0x308   :  { %892 = vrot.lane.b32.xlu0 %v2361_v26, %s1761_s27 }
 0x30a   :  { %894 = vrot.lane.b32.xlu1 %v2365_v58, %s1761_s27 }
 0x30c   :  { %896 = vrot.lane.b32.xlu0 %v2369_v59, %s1761_s27 }
 0x30e   :  { %914 = vrot.lane.b32.xlu1 %v2359_v54, %s1762_s28 }
 0x310   :  { %916 = vrot.lane.b32.xlu0 %v2361_v26, %s1762_s28 }
 0x312   :  { %918 = vrot.lane.b32.xlu1 %v2365_v58, %s1762_s28 }
 0x314   :  { %920 = vrot.lane.b32.xlu0 %v2369_v59, %s1762_s28 }
 0x316   :  { %866 = vrot.lane.b32.xlu1 %v2359_v54, %s1763_s29 }
 0x318   :  { %868 = vrot.lane.b32.xlu0 %v2361_v26, %s1763_s29 }
 0x31a   :  { %870 = vrot.lane.b32.xlu1 %v2365_v58, %s1763_s29 }
 0x31c   :  { %872 = vrot.lane.b32.xlu0 %v2369_v59, %s1763_s29 }
 0x31e   :  { %814 = vrot.lane.b32.xlu1 %v2359_v54, %s1764_s30 }
 0x320   :  { %816 = vrot.lane.b32.xlu0 %v2361_v26, %s1764_s30 }
 0x322   :  { %818 = vrot.lane.b32.xlu1 %v2365_v58, %s1764_s30 }
 0x324   :  { %820 = vrot.lane.b32.xlu0 %v2369_v59, %s1764_s30 }
 0x326   :  { %838 = vrot.lane.b32.xlu1 %v2359_v54, %s1765_s6 }
 0x328   :  { %840 = vrot.lane.b32.xlu0 %v2361_v26, %s1765_s6 }
 0x32a   :  { %842 = vrot.lane.b32.xlu1 %v2365_v58, %s1765_s6 }
 0x32c   :  { %844 = vrot.lane.b32.xlu0 %v2369_v59, %s1765_s6 }
 0x32e   :  { %766 = vrot.lane.b32.xlu1 %v2359_v54, %s1766_s7 }
 0x330   :  { %768 = vrot.lane.b32.xlu0 %v2361_v26, %s1766_s7 }
 0x332   :  { %770 = vrot.lane.b32.xlu1 %v2365_v58, %s1766_s7 }
 0x334   :  { %772 = vrot.lane.b32.xlu0 %v2369_v59, %s1766_s7 }
 0x336   :  { %790 = vrot.lane.b32.xlu1 %v2359_v54, %s1768_s8 }
 0x338   :  { %792 = vrot.lane.b32.xlu0 %v2361_v26, %s1768_s8 }
 0x33a   :  { %794 = vrot.lane.b32.xlu1 %v2365_v58, %s1768_s8 }
 0x33c   :  { %796 = vrot.lane.b32.xlu0 %v2369_v59, %s1768_s8 }
 0x33e   :  { %1024 = vperm.xlu1 %1743, %v1689_v43  }
 0x370   :  { %v939_v5 = vpop.permute.xlu1 %938 }
 0x372   :  { %v941_v8 = vpop.permute.xlu0 %940 }
 0x373   :  { %v948_v16 = vsel %vm220_vm0, %v939_v5, %v941_v8 }
 0x374   :  { %v954_v21 = vmul.f32 %v1908_v12, %v948_v16  ;;  %v943_v22 = vpop.permute.xlu1 %942 }
 0x375   :  { %v947_v61 = vsel %vm220_vm0, %v941_v8, %v943_v22 }
 0x376   :  { %v1016_v20 = vpack.c.bf16 %v954_v21, %v954_v21  ;;  %v955_v63 = vmul.f32 %v1898_v10, %v947_v61  ;;  %v945_v23 = vpop.permute.xlu0 %944 }
 0x377   :  { %v946_v24 = vsel %vm220_vm0, %v943_v22, %v945_v23  ;;  %v949_v25 = vsel %vm220_vm0, %v945_v23, %v939_v5 }
 0x378   :  { %v1017_v27 = vpack.c.bf16 %v955_v63, %v955_v63  ;;  %v956_v29 = vmul.f32 %v1913_v13, %v946_v24  ;;  %v957_v31 = vmul.f32 %v1903_v11, %v949_v25  ;;  %v891_v12 = vpop.permute.xlu1 %890  ;;  %v1031_v10 = vsel %vm305_vm1, %v1016_v20, 0 }
 0x37a   :  { %v1018_v32 = vpack.c.bf16 %v956_v29, %v956_v29  ;;  %v1019_v34 = vpack.c.bf16 %v957_v31, %v957_v31  ;;  %v893_v35 = vpop.permute.xlu0 %892  ;;  %1690 = vmatprep.subr.msk.bf16.mxu0 %vm305_vm1, %v1017_v27 }
 0x37b   :  { %1049 = vmatpush1.bf16.msra.mxu0 %v1031_v10  ;;  %v900_v14 = vsel %vm168_vm3, %v891_v12, %v893_v35 }
 0x37c   :  { %1692 = vmatprep.subr.msk.bf16.mxu1 %vm305_vm1, %v1019_v34  ;;  %v895_v9 = vpop.permute.xlu1 %894  ;;  %v1037_v39 = vsel %vm305_vm1, %v1018_v32, 0  ;;  %v906_v20 = vmul.f32 %v1979_v47, %v900_v14 }
 0x37d   :  { %1090 = vmatpush1.bf16.msra.mxu1 %v1037_v39  ;;  %v899_v11 = vsel %vm168_vm3, %v893_v35, %v895_v9 }
 0x37e   :  { %v897_v48 = vpop.permute.xlu0 %896  ;;  %v907_v21 = vmul.f32 %v1943_v38, %v899_v11 }
 0x37f   :  { %v898_v62 = vsel %vm168_vm3, %v895_v9, %v897_v48  ;;  %v901_v5 = vsel %vm168_vm3, %v897_v48, %v891_v12 }
 0x380   :  { %v915_v37 = vpop.permute.xlu1 %914  ;;  %v908_v63 = vmul.f32 %v1950_v40, %v898_v62 }
 0x382   :  { %v917_v13 = vpop.permute.xlu0 %916 }
 0x383   :  { %v924_v60 = vsel %vm194_vm2, %v915_v37, %v917_v13 }
 0x384   :  { %v919_v43 = vpop.permute.xlu1 %918  ;;  %v930_v8 = vmul.f32 %v1955_v41, %v924_v60  ;;  %v909_v41 = vmul.f32 %v1936_v36, %v901_v5 }
 0x385   :  { %v923_v16 = vsel %vm194_vm2, %v917_v13, %v919_v43 }
 0x386   :  { %v931_v22 = vmul.f32 %v1969_v45, %v923_v16  ;;  %v921_v61 = vpop.permute.xlu0 %920  ;;  %v1012_v45 = vpack.c.bf16 %v930_v8, %v906_v20 }
 0x387   :  { %v922_v23 = vsel %vm194_vm2, %v919_v43, %v921_v61  ;;  %v925_v24 = vsel %vm194_vm2, %v921_v61, %v915_v37 }
 0x388   :  { %v932_v25 = vmul.f32 %v1974_v46, %v922_v23  ;;  %v933_v27 = vmul.f32 %v1964_v44, %v925_v24  ;;  %v867_v38 = vpop.permute.xlu1 %866  ;;  %v1013_v29 = vpack.c.bf16 %v931_v22, %v907_v21 }
 0x38a   :  { %v1014_v31 = vpack.c.bf16 %v932_v25, %v908_v63  ;;  %v869_v12 = vpop.permute.xlu0 %868  ;;  %1050 = vmatprep.subr.bf16.mxu0 %v1013_v29  ;;  %v1015_v47 = vpack.c.bf16 %v933_v27, %v909_v41 }
 0x38b   :  { %v876_v40 = vsel %vm142_vm4, %v867_v38, %v869_v12  ;;  %1051 = vmatpush1.bf16.msra.mxu0 %v1012_v45 }
 0x38c   :  { %1091 = vmatprep.subr.bf16.mxu1 %v1015_v47  ;;  %v871_v32 = vpop.permute.xlu1 %870  ;;  %v882_v34 = vmul.f32 %v2001_v15, %v876_v40 }
 0x38d   :  { %v875_v36 = vsel %vm142_vm4, %v869_v12, %v871_v32  ;;  %1092 = vmatpush1.bf16.msra.mxu1 %v1014_v31 }
 0x38e   :  { %v883_v44 = vmul.f32 %v2013_v18, %v875_v36  ;;  %v873_v46 = vpop.permute.xlu0 %872  ;;  %v1008_v37 = vpack.c.bf16 %v882_v34, %v2359_v54 }
 0x38f   :  { %v874_v35 = vsel %vm142_vm4, %v871_v32, %v873_v46  ;;  %v877_v10 = vsel %vm142_vm4, %v873_v46, %v867_v38 }
 0x390   :  { %v884_v9 = vmul.f32 %v2018_v19, %v874_v35  ;;  %v885_v39 = vmul.f32 %v2008_v17, %v877_v10  ;;  %v815_v48 = vpop.permute.xlu1 %814  ;;  %v1009_v15 = vpack.c.bf16 %v883_v44, %v2361_v26 }
 0x392   :  { %v1010_v13 = vpack.c.bf16 %v884_v9, %v2365_v58  ;;  %v817_v11 = vpop.permute.xlu0 %816  ;;  %1052 = vmatprep.subr.bf16.mxu0 %v1009_v15  ;;  %v1011_v18 = vpack.c.bf16 %v885_v39, %v2369_v59 }
 0x393   :  { %1053 = vmatpush1.bf16.msra.mxu0 %v1008_v37  ;;  %v824_v17 = vsel %vm86_vm5, %v815_v48, %v817_v11 }
 0x394   :  { %1093 = vmatprep.subr.bf16.mxu1 %v1011_v18  ;;  %v819_v60 = vpop.permute.xlu1 %818  ;;  %v831_v54 = vmul.f32 %v2039_v3, %v824_v17 }
 0x395   :  { %1094 = vmatpush1.bf16.msra.mxu1 %v1010_v13  ;;  %v823_v16 = vsel %vm86_vm5, %v817_v11, %v819_v60  ;;  %v1688_v11 = vld [vmem:[%s2816_s2 + $0x8] sm:$0xf] }
 0x396   :  { %v821_v14 = vpop.permute.xlu0 %820  ;;  %v832_v25 = vmul.f32 %v2061_v50, %v823_v16 }
 0x397   :  { %v822_v59 = vsel %vm86_vm5, %v819_v60, %v821_v14  ;;  %v825_v5 = vsel %vm86_vm5, %v821_v14, %v815_v48 }
 0x398   :  { %v839_v62 = vpop.permute.xlu1 %838  ;;  %v830_v20 = vmul.f32 %v2051_v42, %v825_v5  ;;  %v833_v63 = vmul.f32 %v2066_v51, %v822_v59  ;;  %v1723_v5 = vld [vmem:[%s2814_s3 + $0x18] sm:$0xff] }
 0x39a   :  { %v841_v19 = vpop.permute.xlu0 %840 }
 0x39b   :  { %v848_v26 = vsel %vm112_vm6, %v839_v62, %v841_v19 }
 0x39c   :  { %v855_v58 = vmul.f32 %v2046_v1, %v848_v26  ;;  %v843_v43 = vpop.permute.xlu1 %842 }
 0x39d   :  { %v847_v8 = vsel %vm112_vm6, %v841_v19, %v843_v43 }
 0x39e   :  { %v845_v21 = vpop.permute.xlu0 %844  ;;  %v1005_v22 = vpack.c.bf16 %v855_v58, %v831_v54  ;;  %v856_v61 = vmul.f32 %v2081_v56, %v847_v8  ;;  %v1498_v8 = vld [vmem:[%s2817_s4] sm:$0xff] }
 0x39f   :  { %v846_v3 = vsel %vm112_vm6, %v843_v43, %v845_v21  ;;  %v849_v1 = vsel %vm112_vm6, %v845_v21, %v839_v62  ;;  %v1718_v21 = vld [vmem:[%s2815_s1 + $0x100] sm:$0xff] }
 0x3a0   :  { %v854_v23 = vmul.f32 %v2076_v55, %v849_v1  ;;  %v857_v24 = vmul.f32 %v2086_v57, %v846_v3  ;;  %1054 = vmatprep.subr.bf16.mxu0 %v1005_v22  ;;  %v767_v41 = vpop.permute.xlu1 %766  ;;  %v1006_v29 = vpack.c.bf16 %v856_v61, %v832_v25  ;;  %v1719_v3 = vld [vmem:[%s2815_s1 + $0x108] sm:$0xff] }
 0x3a2   :  { %v1004_v27 = vpack.c.bf16 %v854_v23, %v830_v20  ;;  %v769_v56 = vpop.permute.xlu0 %768  ;;  %v1007_v38 = vpack.c.bf16 %v857_v24, %v833_v63  ;;  %v1720_v23 = vld [vmem:[%s2815_s1 + $0x110] sm:$0xff]  ;;  %v1721_v24 = vld [vmem:[%s2815_s1 + $0x118] sm:$0xff] }
 0x3a3   :  { %v776_v51 = vsel %vm35_vm7, %v767_v41, %v769_v56 }
 0x3a4   :  { %1055 = vmatpush1.bf16.msra.mxu0 %v1004_v27  ;;  %1095 = vmatprep.subr.bf16.mxu1 %v1007_v38  ;;  %v771_v45 = vpop.permute.xlu1 %770  ;;  %v783_v12 = vmul.f32 %v776_v51, %v2105_v28 }
 0x3a5   :  { %1096 = vmatpush1.bf16.msra.mxu1 %v1006_v29  ;;  %v775_v36 = vsel %vm35_vm7, %v769_v56, %v771_v45 }
 0x3a6   :  { %v773_v31 = vpop.permute.xlu0 %772  ;;  %v784_v15 = vmul.f32 %v775_v36, %v2127_v0 }
 0x3a7   :  { %v774_v40 = vsel %vm35_vm7, %v771_v45, %v773_v31  ;;  %v777_v32 = vsel %vm35_vm7, %v773_v31, %v767_v41 }
 0x3a8   :  { %v791_v42 = vpop.permute.xlu1 %790  ;;  %v782_v10 = vmul.f32 %v777_v32, %v2117_v33  ;;  %v785_v9 = vmul.f32 %v774_v40, %v2132_v2 }
 0x3aa   :  { %v793_v55 = vpop.permute.xlu0 %792 }
 0x3ab   :  { %v800_v57 = vsel %vm60_vm8, %v791_v42, %v793_v55 }
 0x3ac   :  { %v807_v50 = vmul.f32 %v2112_v30, %v800_v57  ;;  %v795_v47 = vpop.permute.xlu1 %794 }
 0x3ad   :  { %v799_v34 = vsel %vm60_vm8, %v793_v55, %v795_v47 }
 0x3ae   :  { %v797_v44 = vpop.permute.xlu0 %796  ;;  %v1001_v46 = vpack.c.bf16 %v807_v50, %v783_v12  ;;  %v808_v35 = vmul.f32 %v2147_v52, %v799_v34  ;;  %v1714_v34 = vld [vmem:[%s2815_s1 + $0xe0] sm:$0xff] }
 0x3af   :  { %v798_v28 = vsel %vm60_vm8, %v795_v47, %v797_v44  ;;  %v801_v30 = vsel %vm60_vm8, %v797_v44, %v791_v42  ;;  %v1711_v44 = vld [vmem:[%s2815_s1 + $0xc8] sm:$0xff] }
 0x3b0   :  { %v806_v39 = vmul.f32 %v2142_v49, %v801_v30  ;;  %v809_v48 = vmul.f32 %v2152_v53, %v798_v28  ;;  %1056 = vmatprep.subr.bf16.mxu0 %v1001_v46  ;;  %v1002_v52 = vpack.c.bf16 %v808_v35, %v784_v15  ;;  %v1715_v28 = vld [vmem:[%s2815_s1 + $0xe8] sm:$0xff]  ;;  %v1710_v30 = vld [vmem:[%s2815_s1 + $0xc0] sm:$0xff]  ;;  %v1713_v15 = vld [vmem:[%s2815_s1 + $0xd8] sm:$0xff] }
 0x3b2   :  { %v1000_v37 = vpack.c.bf16 %v806_v39, %v782_v10  ;;  %v1003_v13 = vpack.c.bf16 %v809_v48, %v785_v9  ;;  %v1712_v9 = vld [vmem:[%s2815_s1 + $0xd0] sm:$0xff] }
 0x3b4   :  { %1057 = vmatpush1.bf16.msra.mxu0 %v1000_v37  ;;  %1097 = vmatprep.subr.bf16.mxu1 %v1003_v13 }
 0x3b5   :  { %1098 = vmatpush1.bf16.msra.mxu1 %v1002_v52 }
 0x3b7   :  { %1691 = vmatmul.mubr.msk.bf16.vlgmr.msra.gmra.mxu0 %vm301_vm9, %v1688_v11 }
 0x3b8   :  { %1693 = vmatmul.mubr.msk.bf16.vlgmr.msra.gmra.mxu1 %vm301_vm9, %v1688_v11  ;;  %1436 = vmatprep.mubr.bf16.mxu0 %v1767_v4  ;;  %v1716_v11 = vld [vmem:[%s2815_s1 + $0xf0] sm:$0xff] }
 0x3b9   :  { %1477 = vmatprep.mubr.bf16.mxu1 %v1767_v4  ;;  %v1025_v33 = vpop.permute.xlu1 %1024 }
 0x477   :  { %v1076_v0 = vpop.f32.mrf.mxu0 }
 0x478   :  { %v1077_v2 = vadd.f32 %v1076_v0, %v1025_v33  ;;  %v1117_v49 = vpop.f32.mrf.mxu1 }
 0x479   :  { %v1078_v53 = vpop.f32.mrf.mxu0  ;;  %v1118_v60 = vadd.f32 %v1117_v49, %v1025_v33 }
 0x47a   :  { %v2545_v18 = vmax.f32 %v1077_v2, 0.0  ;;  %v1079_v14 = vadd.f32 %v1078_v53, %v1025_v33  ;;  %v1119_v62 = vpop.f32.mrf.mxu1 }
 0x47b   :  { %v1080_v17 = vpop.f32.mrf.mxu0  ;;  %v1120_v26 = vadd.f32 %v1119_v62, %v1025_v33  ;;  %v2551_v4 = vmax.f32 %v1118_v60, 0.0  ;;  %v1717_v33 = vld [vmem:[%s2815_s1 + $0xf8] sm:$0xff] }
 0x47c   :  { %v2547_v19 = vmax.f32 %v1079_v14, 0.0  ;;  %v1121_v54 = vpop.f32.mrf.mxu1  ;;  %1300 = vrot.lane.b32.xlu0 %v2545_v18, %s1760_s22 }
 0x47d   :  { %v1081_v58 = vpop.f32.mrf.mxu0  ;;  %v2555_v59 = vmax.f32 %v1120_v26, 0.0 }
 0x47e   :  { %v1122_v43 = vpop.f32.mrf.mxu1  ;;  %1302 = vrot.lane.b32.xlu1 %v2547_v19, %s1760_s22 }
 0x480   :  { %1304 = vrot.lane.b32.xlu0 %v2551_v4, %s1760_s22 }
 0x482   :  { %1306 = vrot.lane.b32.xlu1 %v2555_v59, %s1760_s22 }
 0x484   :  { %1252 = vrot.lane.b32.xlu0 %v2545_v18, %s1761_s27 }
 0x486   :  { %1254 = vrot.lane.b32.xlu1 %v2547_v19, %s1761_s27 }
 0x488   :  { %1256 = vrot.lane.b32.xlu0 %v2551_v4, %s1761_s27 }
 0x48a   :  { %1258 = vrot.lane.b32.xlu1 %v2555_v59, %s1761_s27 }
 0x48c   :  { %1276 = vrot.lane.b32.xlu0 %v2545_v18, %s1762_s28 }
 0x48e   :  { %1278 = vrot.lane.b32.xlu1 %v2547_v19, %s1762_s28 }
 0x490   :  { %1280 = vrot.lane.b32.xlu0 %v2551_v4, %s1762_s28 }
 0x492   :  { %1282 = vrot.lane.b32.xlu1 %v2555_v59, %s1762_s28 }
 0x494   :  { %1228 = vrot.lane.b32.xlu0 %v2545_v18, %s1763_s29 }
 0x496   :  { %1230 = vrot.lane.b32.xlu1 %v2547_v19, %s1763_s29 }
 0x498   :  { %1232 = vrot.lane.b32.xlu0 %v2551_v4, %s1763_s29 }
 0x49a   :  { %1234 = vrot.lane.b32.xlu1 %v2555_v59, %s1763_s29 }
 0x49c   :  { %1176 = vrot.lane.b32.xlu0 %v2545_v18, %s1764_s30 }
 0x49e   :  { %1178 = vrot.lane.b32.xlu1 %v2547_v19, %s1764_s30 }
 0x4a0   :  { %1180 = vrot.lane.b32.xlu0 %v2551_v4, %s1764_s30 }
 0x4a2   :  { %1182 = vrot.lane.b32.xlu1 %v2555_v59, %s1764_s30 }
 0x4a4   :  { %1200 = vrot.lane.b32.xlu0 %v2545_v18, %s1765_s6 }
 0x4a6   :  { %1202 = vrot.lane.b32.xlu1 %v2547_v19, %s1765_s6 }
 0x4a8   :  { %1204 = vrot.lane.b32.xlu0 %v2551_v4, %s1765_s6 }
 0x4aa   :  { %1206 = vrot.lane.b32.xlu1 %v2555_v59, %s1765_s6 }
 0x4ac   :  { %1128 = vrot.lane.b32.xlu0 %v2545_v18, %s1766_s7 }
 0x4ae   :  { %1130 = vrot.lane.b32.xlu1 %v2547_v19, %s1766_s7 }
 0x4b0   :  { %1132 = vrot.lane.b32.xlu0 %v2551_v4, %s1766_s7 }
 0x4b2   :  { %1134 = vrot.lane.b32.xlu1 %v2555_v59, %s1766_s7 }
 0x4b4   :  { %1152 = vrot.lane.b32.xlu0 %v2545_v18, %s1768_s8 }
 0x4b6   :  { %1154 = vrot.lane.b32.xlu1 %v2547_v19, %s1768_s8 }
 0x4b8   :  { %1156 = vrot.lane.b32.xlu0 %v2551_v4, %s1768_s8 }
 0x4ba   :  { %1158 = vrot.lane.b32.xlu1 %v2555_v59, %s1768_s8 }
 0x4bc   :  { %1386 = vperm.xlu0 %1742, %v1723_v5  }
 0x4be   :  { %1501 = vperm.xlu1 %1743, %v1498_v8  }
 0x4ee   :  { %v1301_v16 = vpop.permute.xlu0 %1300 }
 0x4f0   :  { %v1303_v22 = vpop.permute.xlu1 %1302 }
 0x4f1   :  { %v1310_v61 = vsel %vm220_vm0, %v1301_v16, %v1303_v22 }
 0x4f2   :  { %v1316_v1 = vmul.f32 %v1718_v21, %v1310_v61  ;;  %v1305_v20 = vpop.permute.xlu0 %1304 }
 0x4f3   :  { %v1309_v63 = vsel %vm220_vm0, %v1303_v22, %v1305_v20 }
 0x4f4   :  { %v1378_v41 = vpack.c.bf16 %v1316_v1, %v1316_v1  ;;  %v1317_v25 = vmul.f32 %v1719_v3, %v1309_v63  ;;  %v1307_v27 = vpop.permute.xlu1 %1306  ;;  %v1707_v3 = vld [vmem:[%s2815_s1 + $0xa8] sm:$0xff] }
 0x4f5   :  { %v1308_v56 = vsel %vm220_vm0, %v1305_v20, %v1307_v27  ;;  %v1311_v38 = vsel %vm220_vm0, %v1307_v27, %v1301_v16  ;;  %v1706_v16 = vld [vmem:[%s2815_s1 + $0xa0] sm:$0xff] }
 0x4f6   :  { %v1379_v29 = vpack.c.bf16 %v1317_v25, %v1317_v25  ;;  %v1318_v45 = vmul.f32 %v1720_v23, %v1308_v56  ;;  %v1319_v31 = vmul.f32 %v1721_v24, %v1311_v38  ;;  %v1253_v42 = vpop.permute.xlu0 %1252  ;;  %v1393_v12 = vsel %vm305_vm1, %v1378_v41, 0  ;;  %v1708_v23 = vld [vmem:[%s2815_s1 + $0xb0] sm:$0xff]  ;;  %v1709_v24 = vld [vmem:[%s2815_s1 + $0xb8] sm:$0xff] }
 0x4f8   :  { %v1380_v51 = vpack.c.bf16 %v1318_v45, %v1318_v45  ;;  %v1381_v55 = vpack.c.bf16 %v1319_v31, %v1319_v31  ;;  %v1255_v57 = vpop.permute.xlu1 %1254  ;;  %1724 = vmatprep.subr.msk.bf16.mxu0 %vm305_vm1, %v1379_v29 }
 0x4f9   :  { %1411 = vmatpush1.bf16.msra.mxu0 %v1393_v12  ;;  %v1262_v10 = vsel %vm168_vm3, %v1253_v42, %v1255_v57 }
 0x4fa   :  { %1726 = vmatprep.subr.msk.bf16.mxu1 %vm305_vm1, %v1381_v55  ;;  %v1257_v50 = vpop.permute.xlu0 %1256  ;;  %v1399_v47 = vsel %vm305_vm1, %v1380_v51, 0  ;;  %v1268_v53 = vmul.f32 %v1710_v30, %v1262_v10 }
 0x4fb   :  { %1452 = vmatpush1.bf16.msra.mxu1 %v1399_v47  ;;  %v1261_v46 = vsel %vm168_vm3, %v1255_v57, %v1257_v50 }
 0x4fc   :  { %v1259_v40 = vpop.permute.xlu1 %1258  ;;  %v1269_v0 = vmul.f32 %v1711_v44, %v1261_v46  ;;  %v1704_v44 = vld [vmem:[%s2815_s1 + $0x70] sm:$0xff] }
 0x4fd   :  { %v1260_v39 = vsel %vm168_vm3, %v1257_v50, %v1259_v40  ;;  %v1263_v37 = vsel %vm168_vm3, %v1259_v40, %v1253_v42  ;;  %v1699_v40 = vld [vmem:[%s2815_s1 + $0x48] sm:$0xff] }
 0x4fe   :  { %v1277_v32 = vpop.permute.xlu0 %1276  ;;  %v1270_v60 = vmul.f32 %v1712_v9, %v1260_v39  ;;  %v1271_v17 = vmul.f32 %v1713_v15, %v1263_v37  ;;  %v1702_v9 = vld [vmem:[%s2815_s1 + $0x60] sm:$0xff]  ;;  %v1705_v39 = vld [vmem:[%s2815_s1 + $0x78] sm:$0xff] }
 0x500   :  { %v1279_v36 = vpop.permute.xlu1 %1278 }
 0x501   :  { %v1286_v35 = vsel %vm194_vm2, %v1277_v32, %v1279_v36 }
 0x502   :  { %v1281_v48 = vpop.permute.xlu0 %1280  ;;  %v1292_v13 = vmul.f32 %v1714_v34, %v1286_v35  ;;  %v1698_v34 = vld [vmem:[%s2815_s1 + $0x40] sm:$0xff]  ;;  %v1701_v35 = vld [vmem:[%s2815_s1 + $0x58] sm:$0xff] }
 0x503   :  { %v1285_v52 = vsel %vm194_vm2, %v1279_v36, %v1281_v48 }
 0x504   :  { %v1293_v2 = vmul.f32 %v1715_v28, %v1285_v52  ;;  %v1283_v49 = vpop.permute.xlu1 %1282  ;;  %v1374_v5 = vpack.c.bf16 %v1292_v13, %v1268_v53 }
 0x505   :  { %v1284_v14 = vsel %vm194_vm2, %v1281_v48, %v1283_v49  ;;  %v1287_v62 = vsel %vm194_vm2, %v1283_v49, %v1277_v32  ;;  %v1700_v48 = vld [vmem:[%s2815_s1 + $0x50] sm:$0xff] }
 0x506   :  { %v1294_v26 = vmul.f32 %v1716_v11, %v1284_v14  ;;  %v1295_v54 = vmul.f32 %v1717_v33, %v1287_v62  ;;  %v1229_v58 = vpop.permute.xlu0 %1228  ;;  %v1375_v43 = vpack.c.bf16 %v1293_v2, %v1269_v0 }
 0x508   :  { %v1376_v8 = vpack.c.bf16 %v1294_v26, %v1270_v60  ;;  %v1231_v21 = vpop.permute.xlu1 %1230  ;;  %1412 = vmatprep.subr.bf16.mxu0 %v1375_v43  ;;  %v1377_v22 = vpack.c.bf16 %v1295_v54, %v1271_v17 }
 0x509   :  { %v1238_v61 = vsel %vm142_vm4, %v1229_v58, %v1231_v21  ;;  %1413 = vmatpush1.bf16.msra.mxu0 %v1374_v5 }
 0x50a   :  { %1453 = vmatprep.subr.bf16.mxu1 %v1377_v22  ;;  %v1233_v1 = vpop.permute.xlu0 %1232  ;;  %v1244_v20 = vmul.f32 %v1706_v16, %v1238_v61 }
 0x50b   :  { %v1237_v63 = vsel %vm142_vm4, %v1231_v21, %v1233_v1  ;;  %1454 = vmatpush1.bf16.msra.mxu1 %v1376_v8  ;;  %v1141_v8 = vld [vmem:[%s2815_s1 + $0x8] sm:$0xff] }
 0x50c   :  { %v1245_v41 = vmul.f32 %v1707_v3, %v1237_v63  ;;  %v1235_v25 = vpop.permute.xlu1 %1234  ;;  %v1370_v42 = vpack.c.bf16 %v1244_v20, %v2545_v18  ;;  %v1703_v18 = vld [vmem:[%s2815_s1 + $0x68] sm:$0xff]  ;;  %v1696_v63 = vld [vmem:[%s2815_s1 + $0x30] sm:$0xff] }
 0x50d   :  { %v1236_v27 = vsel %vm142_vm4, %v1233_v1, %v1235_v25  ;;  %v1239_v56 = vsel %vm142_vm4, %v1235_v25, %v1229_v58  ;;  %v1695_v21 = vld [vmem:[%s2815_s1 + $0x28] sm:$0xff]  ;;  %v1140_v1 = vld [vmem:[%s2815_s1] sm:$0xff] }
 0x50e   :  { %v1246_v38 = vmul.f32 %v1708_v23, %v1236_v27  ;;  %v1247_v29 = vmul.f32 %v1709_v24, %v1239_v56  ;;  %v1177_v45 = vpop.permute.xlu0 %1176  ;;  %v1371_v31 = vpack.c.bf16 %v1245_v41, %v2547_v19  ;;  %v1143_v24 = vld [vmem:[%s2815_s1 + $0x18] sm:$0xff]  ;;  %v1694_v56 = vld [vmem:[%s2815_s1 + $0x20] sm:$0xff] }
 0x510   :  { %v1372_v51 = vpack.c.bf16 %v1246_v38, %v2551_v4  ;;  %v1179_v55 = vpop.permute.xlu1 %1178  ;;  %1414 = vmatprep.subr.bf16.mxu0 %v1371_v31  ;;  %v1373_v57 = vpack.c.bf16 %v1247_v29, %v2555_v59  ;;  %v1697_v38 = vld [vmem:[%s2815_s1 + $0x38] sm:$0xff]  ;;  %v1142_v29 = vld [vmem:[%s2815_s1 + $0x10] sm:$0xff] }
 0x511   :  { %1415 = vmatpush1.bf16.msra.mxu0 %v1370_v42  ;;  %v1186_v19 = vsel %vm86_vm5, %v1177_v45, %v1179_v55 }
 0x512   :  { %1455 = vmatprep.subr.bf16.mxu1 %v1373_v57  ;;  %v1181_v12 = vpop.permute.xlu0 %1180  ;;  %v1193_v32 = vmul.f32 %v1699_v40, %v1186_v19 }
 0x513   :  { %1456 = vmatpush1.bf16.msra.mxu1 %v1372_v51  ;;  %v1185_v15 = vsel %vm86_vm5, %v1179_v55, %v1181_v12 }
 0x514   :  { %v1183_v50 = vpop.permute.xlu1 %1182  ;;  %v1194_v14 = vmul.f32 %v1700_v48, %v1185_v15  ;;  %v1491_v15 = vld [vmem:[%s2813_s0 + $0x8] sm:$0xff] }
 0x515   :  { %v1184_v28 = vsel %vm86_vm5, %v1181_v12, %v1183_v50  ;;  %v1187_v30 = vsel %vm86_vm5, %v1183_v50, %v1177_v45 }
 0x516   :  { %v1201_v47 = vpop.permute.xlu0 %1200  ;;  %v1192_v0 = vmul.f32 %v1698_v34, %v1187_v30  ;;  %v1195_v2 = vmul.f32 %v1701_v35, %v1184_v28 }
 0x518   :  { %v1203_v4 = vpop.permute.xlu1 %1202 }
 0x519   :  { %v1210_v59 = vsel %vm112_vm6, %v1201_v47, %v1203_v4 }
 0x51a   :  { %v1217_v36 = vmul.f32 %v1703_v18, %v1210_v59  ;;  %v1205_v46 = vpop.permute.xlu0 %1204 }
 0x51b   :  { %v1209_v10 = vsel %vm112_vm6, %v1203_v4, %v1205_v46 }
 0x51c   :  { %v1207_v37 = vpop.permute.xlu1 %1206  ;;  %v1367_v13 = vpack.c.bf16 %v1217_v36, %v1193_v32  ;;  %v1218_v52 = vmul.f32 %v1704_v44, %v1209_v10  ;;  %v1722_v32 = vld [vmem:[%s2816_s2 + $0xc] sm:$0xf]  ;;  %v1492_v10 = vld [vmem:[%s2813_s0 + $0x10] sm:$0xff] }
 0x51d   :  { %v1208_v11 = vsel %vm112_vm6, %v1205_v46, %v1207_v37  ;;  %v1211_v33 = vsel %vm112_vm6, %v1207_v37, %v1201_v47  ;;  %v1490_v46 = vld [vmem:[%s2813_s0] sm:$0xff] }
 0x51e   :  { %v1216_v49 = vmul.f32 %v1702_v9, %v1211_v33  ;;  %v1219_v53 = vmul.f32 %v1705_v39, %v1208_v11  ;;  %1416 = vmatprep.subr.bf16.mxu0 %v1367_v13  ;;  %v1129_v60 = vpop.permute.xlu0 %1128  ;;  %v1368_v54 = vpack.c.bf16 %v1218_v52, %v1194_v14  ;;  %v1493_v33 = vld [vmem:[%s2813_s0 + $0x18] sm:$0xff] }
 0x520   :  { %v1366_v62 = vpack.c.bf16 %v1216_v49, %v1192_v0  ;;  %v1131_v17 = vpop.permute.xlu1 %1130  ;;  %v1369_v26 = vpack.c.bf16 %v1219_v53, %v1195_v2 }
 0x521   :  { %v1138_v16 = vsel %vm35_vm7, %v1129_v60, %v1131_v17 }
 0x522   :  { %1417 = vmatpush1.bf16.msra.mxu0 %v1366_v62  ;;  %1457 = vmatprep.subr.bf16.mxu1 %v1369_v26  ;;  %v1133_v58 = vpop.permute.xlu0 %1132  ;;  %v1145_v3 = vmul.f32 %v1141_v8, %v1138_v16 }
 0x523   :  { %1458 = vmatpush1.bf16.msra.mxu1 %v1368_v54  ;;  %v1137_v45 = vsel %vm35_vm7, %v1131_v17, %v1133_v58 }
 0x524   :  { %v1135_v43 = vpop.permute.xlu1 %1134  ;;  %v1146_v19 = vmul.f32 %v1142_v29, %v1137_v45 }
 0x525   :  { %v1136_v41 = vsel %vm35_vm7, %v1133_v58, %v1135_v43  ;;  %v1139_v25 = vsel %vm35_vm7, %v1135_v43, %v1129_v60 }
 0x526   :  { %v1153_v5 = vpop.permute.xlu0 %1152  ;;  %v1144_v12 = vmul.f32 %v1140_v1, %v1139_v25  ;;  %v1147_v50 = vmul.f32 %v1143_v24, %v1136_v41 }
 0x528   :  { %v1155_v22 = vpop.permute.xlu1 %1154 }
 0x529   :  { %v1162_v61 = vsel %vm60_vm8, %v1153_v5, %v1155_v22 }
 0x52a   :  { %v1169_v20 = vmul.f32 %v1695_v21, %v1162_v61  ;;  %v1157_v23 = vpop.permute.xlu0 %1156 }
 0x52b   :  { %v1161_v27 = vsel %vm60_vm8, %v1155_v22, %v1157_v23 }
 0x52c   :  { %v1159_v31 = vpop.permute.xlu1 %1158  ;;  %v1363_v42 = vpack.c.bf16 %v1169_v20, %v1145_v3  ;;  %v1170_v51 = vmul.f32 %v1696_v63, %v1161_v27 }
 0x52d   :  { %v1160_v55 = vsel %vm60_vm8, %v1157_v23, %v1159_v31  ;;  %v1163_v57 = vsel %vm60_vm8, %v1159_v31, %v1153_v5 }
 0x52e   :  { %v1168_v47 = vmul.f32 %v1694_v56, %v1163_v57  ;;  %v1171_v40 = vmul.f32 %v1697_v38, %v1160_v55  ;;  %1418 = vmatprep.subr.bf16.mxu0 %v1363_v42  ;;  %v1364_v59 = vpack.c.bf16 %v1170_v51, %v1146_v19 }
 0x530   :  { %v1362_v18 = vpack.c.bf16 %v1168_v47, %v1144_v12  ;;  %v1365_v4 = vpack.c.bf16 %v1171_v40, %v1147_v50 }
 0x532   :  { %1419 = vmatpush1.bf16.msra.mxu0 %v1362_v18  ;;  %1459 = vmatprep.subr.bf16.mxu1 %v1365_v4 }
 0x533   :  { %1460 = vmatpush1.bf16.msra.mxu1 %v1364_v59 }
 0x535   :  { %1725 = vmatmul.mubr.msk.bf16.vlgmr.msra.gmra.mxu0 %vm301_vm9, %v1722_v32 }
 0x536   :  { %1727 = vmatmul.mubr.msk.bf16.vlgmr.msra.gmra.mxu1 %vm301_vm9, %v1722_v32 }
 0x537   :  { %v1387_v7 = vpop.permute.xlu0 %1386 }
 0x539   :  { %v1502_v2 = vpop.permute.xlu1 %1501 }
 0x5f5   :  { %v1438_v34 = vpop.f32.mrf.mxu0 }
 0x5f6   :  { %v1439_v36 = vadd.f32 %v1438_v34, %v1387_v7  ;;  %v1479_v44 = vpop.f32.mrf.mxu1 }
 0x5f7   :  { %v1480_v35 = vadd.f32 %v1479_v44, %v1387_v7  ;;  %v1440_v28 = vpop.f32.mrf.mxu0  ;;  %v1769_v44 = vmov 1966171168  }
 0x5f8   :  { %v1486_v30 = vmax.f32 %v1439_v36, 0.0  ;;  %v1441_v9 = vadd.f32 %v1440_v28, %v1387_v7  ;;  %v1481_v39 = vpop.f32.mrf.mxu1  ;;  %v1566_v28 = vshrl.u32 %v33_v6, 7 }
 0x5f9   :  { %v1488_v48 = vmax.f32 %v1480_v35, 0.0  ;;  %v1482_v37 = vadd.f32 %v1481_v39, %v1387_v7  ;;  %v1442_v13 = vpop.f32.mrf.mxu0 }
 0x5fa   :  { %v1494_v52 = vadd.f32 %v1490_v46, %v1486_v30  ;;  %v1487_v11 = vmax.f32 %v1441_v9, 0.0  ;;  %v1483_v0 = vpop.f32.mrf.mxu1  ;;  %v1563_v46 = vunpack.c.l.s4 %v1769_v44 }
 0x5fb   :  { %v1496_v49 = vadd.f32 %v1492_v10, %v1488_v48  ;;  %v1489_v53 = vmax.f32 %v1482_v37, 0.0  ;;  %v1443_v60 = vpop.f32.mrf.mxu0 }
 0x5fc   :  { %v1504_v14 = vmul.f32 %v1502_v2, %v1494_v52  ;;  %v1495_v62 = vadd.f32 %v1491_v15, %v1487_v11  ;;  %v1484_v17 = vpop.f32.mrf.mxu1  ;;  %v1564_v35 = vunpack.c.0.s8 %v1563_v46 }
 0x5fd   :  { %v1506_v26 = vmul.f32 %v1502_v2, %v1496_v49  ;;  %v1497_v54 = vadd.f32 %v1493_v33, %v1489_v53 }
 0x5fe   :  { %v1508_v58 = vrot.slane %v1504_v14, 4  ;;  %v1505_v43 = vmul.f32 %v1502_v2, %v1495_v62  ;;  %v1567_v9 = vsub.s32 %v1564_v35, %v1566_v28 }
 0x5ff   :  { %v1520_v5 = vrot.slane %v1506_v26, 4  ;;  %v1507_v8 = vmul.f32 %v1502_v2, %v1497_v54 }
 0x600   :  { %v1509_v16 = vadd.f32 %v1508_v58, %v1504_v14  ;;  %v1514_v21 = vrot.slane %v1505_v43, 4 }
 0x601   :  { %v1521_v22 = vadd.f32 %v1520_v5, %v1506_v26  ;;  %v1526_v61 = vrot.slane %v1507_v8, 4 }
 0x602   :  { %v1510_v3 = vrot.slane %v1509_v16, 2  ;;  %v1515_v1 = vadd.f32 %v1514_v21, %v1505_v43 }
 0x603   :  { %v1522_v20 = vrot.slane %v1521_v22, 2  ;;  %v1527_v63 = vadd.f32 %v1526_v61, %v1507_v8 }
 0x604   :  { %v1511_v23 = vadd.f32 %v1510_v3, %v1509_v16  ;;  %v1516_v24 = vrot.slane %v1515_v1, 2 }
 0x605   :  { %v1523_v41 = vadd.f32 %v1522_v20, %v1521_v22  ;;  %v1528_v25 = vrot.slane %v1527_v63, 2 }
 0x606   :  { %v1512_v27 = vrot.slane %v1511_v23, 1  ;;  %v1517_v56 = vadd.f32 %v1516_v24, %v1515_v1 }
 0x607   :  { %v1524_v38 = vrot.slane %v1523_v41, 1  ;;  %v1529_v29 = vadd.f32 %v1528_v25, %v1527_v63 }
 0x608   :  { %v1513_v45 = vadd.f32 %v1512_v27, %v1511_v23  ;;  %v1518_v31 = vrot.slane %v1517_v56, 1 }
 0x609   :  { %v1525_v42 = vadd.f32 %v1524_v38, %v1523_v41  ;;  %v1530_v51 = vrot.slane %v1529_v29, 1 }
 0x60a   :  { %v1728_v55 = vmul.f32 -1.442695, %v1513_v45  ;;  %v1519_v57 = vadd.f32 %v1518_v31, %v1517_v56 }
 0x60b   :  { %v1730_v12 = vmul.f32 -1.442695, %v1525_v42  ;;  %v1531_v50 = vadd.f32 %v1530_v51, %v1529_v29 }
 0x60c   :  { %1744 = vpow2.f32 %v1728_v55  ;;  %v1729_v47 = vmul.f32 -1.442695, %v1519_v57 }
 0x60d   :  { %1746 = vpow2.f32 %v1730_v12  ;;  %v1731_v40 = vmul.f32 -1.442695, %v1531_v50 }
 0x60e   :  { %1748 = vpow2.f32 %v1729_v47 }
 0x60f   :  { %1750 = vpow2.f32 %v1731_v40 }
 0x619   :  { %v1745_v19 = vpop.eup %1744 }
 0x61a   :  { %v1747_v18 = vpop.eup %1746  ;;  %v1544_v4 = vadd.f32 1.0, %v1745_v19 }
 0x61b   :  { %v1749_v59 = vpop.eup %1748  ;;  %v1546_v32 = vadd.f32 1.0, %v1747_v18 }
 0x61c   :  { %v1751_v7 = vpop.eup %1750  ;;  %1752 = vrcp.f32 %v1544_v4  ;;  %v1545_v34 = vadd.f32 1.0, %v1749_v59 }
 0x61d   :  { %1754 = vrcp.f32 %v1546_v32  ;;  %v1547_v36 = vadd.f32 1.0, %v1751_v7 }
 0x61e   :  { %1756 = vrcp.f32 %v1545_v34 }
 0x61f   :  { %1758 = vrcp.f32 %v1547_v36 }
 0x629   :  { %v1753_v30 = vpop.eup %1752 }
 0x62a   :  { %v1755_v10 = vpop.eup %1754 }
 0x62b   :  { %v1757_v39 = vpop.eup %1756 }
 0x62c   :  { %v1759_v48 = vpop.eup %1758  ;;  %v1560_v15 = vcombine.low %v1753_v30, %v1757_v39 }
 0x62d   :  { %v1561_v37 = vcombine.low %v1755_v10, %v1759_v48 }
 0x62e   :  { %v1568_v13 = vrot.slane %v1560_v15, %v1567_v9 }
 0x62f   :  { %v1575_v52 = vrot.slane %v1561_v37, %v1567_v9 }
 0x631   :  { %v1576_v11 = vcombine.low %v1568_v13, %v1575_v52 }
 0x633   :  { %v1583_v33 = vrot.slane %v1576_v11, %v1567_v9 }
 0x635   :  { %1589 = vst.msk [vmem:[%s2818_s5] sm:$0xf] %vm1587_vm10, %v1583_v33 }

</bundles_post_ra>
